<compile_context>
chip_gen: v7x
topology: tpu7x:2x2x1
jax: 0.10.0
libtpu: 0.0.40
codegen_flags: <defaults>
</compile_context>

<pallas_src>
import jax
import jax.numpy as jnp
from jax import lax
from jax.experimental import pallas as pl
from jax.experimental.pallas import tpu as pltpu


def _pick_q_tile(n):
    """Largest convenient query tile that evenly divides n.

    256/512 fill the M side of the 2x256^2 MXU on v6e/v7x; v5e's 4x128^2 MXU
    gains little beyond 128 (pass q_tile=128 explicitly there if desired).
    """
    for t in (512, 256, 128, 64, 32, 16, 8):
        if t <= n and n % t == 0:
            return t
    return n


def make_attention_hlora_kernel(num_heads, head_dim, q_tile, approx_recip):
    """Fused attention kernel: one (batch, query-tile) per grid step."""
    H, hd = num_heads, head_dim
    C = H * hd
    TQ = q_tile

    def kernel(xf_ref, wq_ref, wkv_ref, wp_ref, bp_ref, o_ref, kv_scr, ctx_scr):
        cdt = kv_scr.dtype  # MXU operand dtype (bf16 by default)

        # ---- K/V projection: once per batch element (first query tile),
        # written directly into the VMEM scratch slab (no transient copy). ---
        @pl.when(pl.program_id(1) == 0)
        def _():
            xf = xf_ref[...].astype(cdt)                          # (N, C)
            kv_scr[...] = jnp.dot(
                xf, wkv_ref[...],
                preferred_element_type=jnp.float32).astype(cdt)   # (N, 2C)

        # ---- Q projection for this query tile (softmax scale pre-folded);
        # the tile is sliced from the resident full-sequence block. ----------
        row0 = pl.multiple_of(pl.program_id(1) * TQ, TQ)
        xq = xf_ref[pl.ds(row0, TQ), :].astype(cdt)               # (TQ, C)
        q = jnp.dot(xq, wq_ref[...],
                    preferred_element_type=jnp.float32).astype(cdt)  # (TQ, C)

        # ---- per-head attention --------------------------------------------
        # TODO(synk): for H >= 16 switch to lax.fori_loop(..., unroll=2) with
        # head-major scratch to bound vreg live ranges; for hd < 128, pairing
        # heads at the PV/store stage would make ctx_scr stores lane-dense.
        for h in range(H):                                        # static unroll
            sl = slice(h * hd, (h + 1) * hd)
            q_h = q[:, sl]                                        # (TQ, hd)
            k_h = kv_scr[:, sl]                                   # (N,  hd)
            v_h = kv_scr[:, C + h * hd:C + (h + 1) * hd]          # (N,  hd)

            # q_h @ k_h^T without materializing a transpose of k_h.
            s = lax.dot_general(
                q_h, k_h,
                dimension_numbers=(((1,), (1,)), ((), ())),
                preferred_element_type=jnp.float32)               # (TQ, N) f32
            # Softmax kept in f32; normalization deferred to the (TQ, hd)
            # context instead of the (TQ, N) probability matrix.
            s = s - jnp.max(s, axis=-1, keepdims=True)
            p = jnp.exp(s)
            denom = jnp.sum(p, axis=-1, keepdims=True)            # (TQ, 1)
            ctx_h = jnp.dot(p.astype(cdt), v_h,
                            preferred_element_type=jnp.float32)   # (TQ, hd)
            inv = pl.reciprocal(denom, approx=approx_recip)
            # attn_drop / proj_drop have p=0.0 -> identity in this forward.
            ctx_scr[:, sl] = (ctx_h * inv).astype(cdt)

        # ---- output projection (single lane-dense GEMM) ---------------------
        y = jnp.dot(ctx_scr[...], wp_ref[...],
                    preferred_element_type=jnp.float32) + bp_ref[...]
        o_ref[...] = y.astype(o_ref.dtype)

    return kernel


def attention_hlora_forward(x, params, task, num_heads, q_tile=None,
                            use_bf16=True, vmem_limit_bytes=None):
    """JAX wrapper reproducing Attention_HLoRA.forward(x, task)."""
    B, N, C = x.shape
    head_dim = C // num_heads
    scale = head_dim ** (-0.5)
    cdt = jnp.bfloat16 if use_bf16 else jnp.float32

    Wqkv = params["qkv_w"]      # (3C, C)  -> torch nn.Linear(dim, 3*dim).weight
    Wp, bp = params["proj_w"], params["proj_b"]

    # HLoRA weight merge (torch: stack(B[:task+1]).sum(0) @ A), transposed so
    # the kernel computes x @ W == F.linear(x, weight).
    weight_k = jnp.sum(params["B_k"][: task + 1], axis=0) @ params["A_k"]
    weight_v = jnp.sum(params["B_v"][: task + 1], axis=0) @ params["A_v"]

    wq_eff = (Wqkv[0:C].T * scale).astype(cdt)                 # scale folded in
    wk_eff = Wqkv[C:2 * C].T + weight_k.T
    wv_eff = Wqkv[2 * C:3 * C].T + weight_v.T
    wkv_eff = jnp.concatenate([wk_eff, wv_eff], axis=1).astype(cdt)   # (C, 2C)
    wp_eff = Wp.T.astype(cdt)                                  # (C, C)
    bp2 = bp.reshape(1, C).astype(jnp.float32)

    TQ = q_tile or _pick_q_tile(N)
    assert N % TQ == 0, "query tile must divide sequence length"
    # TODO(synk): pad/mask for sequence lengths not divisible by 8 (ViT N=197).
    NQ = N // TQ

    # Scoped-VMEM budget from the actual resident set (single-buffered
    # constants + full-seq KV cache + ctx slab + double-buffered output +
    # transient TQxN f32 logits), capped at ~100 MiB for v5e/v6e headroom.
    isz = jnp.dtype(cdt).itemsize
    xsz = x.dtype.itemsize
    est = (N * C * xsz + 4 * C * C * isz + C * 4
           + 2 * TQ * C * xsz + N * 2 * C * isz + TQ * C * isz
           + 2 * TQ * N * 4)
    vmem_limit = vmem_limit_bytes or int(
        min(100 * 1024 * 1024, max(32 * 1024 * 1024, 2 * est)))
    # TODO(synk): on v7x (64 MiB VMEM/TC) with large N*C, switch to a streamed
    # flash-style KV loop instead of caching full-sequence K/V in VMEM, and
    # remap megacore parallelism off the batch axis when B < 2.

    kernel = make_attention_hlora_kernel(num_heads, head_dim, TQ,
                                         approx_recip=use_bf16)

    def _build_and_run(single_buffer_consts):
        pm = pl.Buffered(1) if single_buffer_consts else None

        def spec(shape, imap):
            if pm is None:
                return pl.BlockSpec(shape, imap)
            return pl.BlockSpec(shape, imap, pipeline_mode=pm)

        in_specs = [
            spec((None, N, C), lambda b, qi: (b, 0, 0)),   # x (full seq, per batch)
            spec((C, C), lambda b, qi: (0, 0)),            # wq_eff (scaled)
            spec((C, 2 * C), lambda b, qi: (0, 0)),        # [wk_eff | wv_eff]
            spec((C, C), lambda b, qi: (0, 0)),            # wp_eff
            spec((1, C), lambda b, qi: (0, 0)),            # proj bias
        ]
        return pl.pallas_call(
            kernel,
            out_shape=jax.ShapeDtypeStruct((B, N, C), x.dtype),
            grid_spec=pltpu.PrefetchScalarGridSpec(
                num_scalar_prefetch=0,
                grid=(B, NQ),
                in_specs=in_specs,
                out_specs=pl.BlockSpec((None, TQ, C), lambda b, qi: (b, qi, 0)),
                scratch_shapes=[
                    pltpu.VMEM((N, 2 * C), cdt),   # [K | V] cache per batch elem
                    pltpu.VMEM((TQ, C), cdt),      # per-tile context slab
                ],
            ),
            compiler_params=pltpu.CompilerParams(
                dimension_semantics=("parallel", "arbitrary"),
                vmem_limit_bytes=vmem_limit,
            ),
        )(x, wq_eff, wkv_eff, wp_eff, bp2)

    try:
        return _build_and_run(True)
    except Exception:
        # Graceful fallback if this jax build rejects pipeline_mode=Buffered(1)
        # for automatically pipelined inputs; identical kernel, just default
        # (double-buffered) constants.
        return _build_and_run(False)


def reference_forward(x, params, task, num_heads):
    """Pure-jnp re-implementation of the torch forward (for verification)."""
    B, N, C = x.shape
    head_dim = C // num_heads
    scale = head_dim ** (-0.5)

    Wqkv, Wp, bp = params["qkv_w"], params["proj_w"], params["proj_b"]
    weight_k = jnp.sum(params["B_k"][: task + 1], axis=0) @ params["A_k"]
    weight_v = jnp.sum(params["B_v"][: task + 1], axis=0) @ params["A_v"]

    qkv = x @ Wqkv.T
    q, k, v = qkv[..., :C], qkv[..., C:2 * C], qkv[..., 2 * C:]
    k = k + x @ weight_k.T
    v = v + x @ weight_v.T

    def split(t):
        return t.reshape(B, N, num_heads, head_dim).transpose(0, 2, 1, 3)

    q, k, v = split(q), split(k), split(v)             # (B, H, N, hd)
    attn = jax.nn.softmax(q @ k.transpose(0, 1, 3, 2) * scale, axis=-1)
    ctx = (attn @ v).transpose(0, 2, 1, 3).reshape(B, N, C)
    return ctx @ Wp.T + bp


if __name__ == "__main__":
    # Small shapes consistent with the module: dim divisible by num_heads.
    B, N, C = 2, 8, 32
    num_heads = 4
    r = 16
    n_tasks = 3
    task = 1

    key = jax.random.PRNGKey(0)
    ks = jax.random.split(key, 8)
    params = {
        "qkv_w": jax.random.normal(ks[0], (3 * C, C), jnp.float32) * 0.1,
        "A_k":   jax.random.normal(ks[1], (r, C), jnp.float32) * 0.1,
        "B_k":   jax.random.normal(ks[2], (n_tasks, C, r), jnp.float32) * 0.1,
        "A_v":   jax.random.normal(ks[3], (r, C), jnp.float32) * 0.1,
        "B_v":   jax.random.normal(ks[4], (n_tasks, C, r), jnp.float32) * 0.1,
        "proj_w": jax.random.normal(ks[5], (C, C), jnp.float32) * 0.1,
        "proj_b": jax.random.normal(ks[6], (C,), jnp.float32) * 0.1,
    }
    x = jax.random.normal(ks[7], (B, N, C), jnp.float32)

    # TODO(synk): get_feat / get_cur_feat running covariance stats, dropout RNG
    # (p=0 here) and register_hook attention-map saving are stateful side
    # effects with no forward-output impact; not modeled in the kernel.

    ref = reference_forward(x, params, task, num_heads)

    # f32-operand path: tight check of kernel structure.
    out_f32 = jax.block_until_ready(
        attention_hlora_forward(x, params, task, num_heads, use_bf16=False))
    assert out_f32.shape == (B, N, C)
    assert jnp.allclose(out_f32, ref, rtol=1e-4, atol=1e-4), (
        f"f32 path max abs err {jnp.max(jnp.abs(out_f32 - ref))}")

    # bf16 MXU-operand path (default): relaxed tolerance for bf16 rounding and
    # approximate reciprocal.
    out = jax.block_until_ready(
        attention_hlora_forward(x, params, task, num_heads))
    assert out.shape == (B, N, C)
    assert jnp.allclose(out, ref, rtol=3e-2, atol=3e-2), (
        f"bf16 path max abs err {jnp.max(jnp.abs(out - ref))}")

    print("KERNEL_OK")
</pallas_src>

<mosaic_0001>
module attributes {stable_mosaic.version = 11 : i64} {
  func.func @kernel(%arg0: i32, %arg1: i32, %arg2: memref<1x8x32xf32, #tpu.memory_space<vmem>>, %arg3: memref<32x32xf32, #tpu.memory_space<vmem>>, %arg4: memref<32x64xf32, #tpu.memory_space<vmem>>, %arg5: memref<32x32xf32, #tpu.memory_space<vmem>>, %arg6: memref<1x32xf32, #tpu.memory_space<vmem>>, %arg7: memref<1x8x32xf32, #tpu.memory_space<vmem>>, %arg8: memref<8x64xf32, #tpu.memory_space<vmem>>, %arg9: memref<8x32xf32, #tpu.memory_space<vmem>>) attributes {dimension_semantics = [#tpu.dimension_semantics<parallel>, #tpu.dimension_semantics<arbitrary>], iteration_bounds = array<i64: 2, 1>, scalar_prefetch = 0 : i64, scratch_operands = 2 : i64, tpu.core_type = #tpu.core_type<tc>, window_params = [{pipeline_mode = #tpu.pipeline_mode<synchronous>, transform_indices = @transform_0, window_bounds = array<i64: 1, 8, 32>}, {pipeline_mode = #tpu.pipeline_mode<synchronous>, transform_indices = @transform_1, window_bounds = array<i64: 32, 32>}, {pipeline_mode = #tpu.pipeline_mode<synchronous>, transform_indices = @transform_2, window_bounds = array<i64: 32, 64>}, {pipeline_mode = #tpu.pipeline_mode<synchronous>, transform_indices = @transform_3, window_bounds = array<i64: 32, 32>}, {pipeline_mode = #tpu.pipeline_mode<synchronous>, transform_indices = @transform_4, window_bounds = array<i64: 1, 32>}, {transform_indices = @transform_5, window_bounds = array<i64: 1, 8, 32>}]} {
    %c0_i32 = arith.constant 0 : i32
    %0 = arith.cmpi eq, %arg1, %c0_i32 : i32
    %1 = arith.extui %0 : i1 to i32
    %c0_i32_0 = arith.constant 0 : i32
    %2 = arith.cmpi ne, %1, %c0_i32_0 : i32
    scf.if %2 {
      %c0_47 = arith.constant 0 : index
      %c0_48 = arith.constant 0 : index
      %c0_49 = arith.constant 0 : index
      %83 = vector.load %arg2[%c0_47, %c0_48, %c0_49] : memref<1x8x32xf32, #tpu.memory_space<vmem>>, vector<1x8x32xf32>
      %84 = vector.shape_cast %83 : vector<1x8x32xf32> to vector<8x32xf32>
      %c0_50 = arith.constant 0 : index
      %c0_51 = arith.constant 0 : index
      %85 = vector.load %arg4[%c0_50, %c0_51] : memref<32x64xf32, #tpu.memory_space<vmem>>, vector<32x64xf32>
      %cst_52 = arith.constant dense<0.000000e+00> : vector<8x64xf32>
      %86 = tpu.matmul %84, %85, %cst_52 {dimension_numbers = #tpu.dot_dimension_numbers<[1], [0], [0], [1], [0, 0, 1, 1], [], []>} : vector<8x32xf32>, vector<32x64xf32>, vector<8x64xf32> -> vector<8x64xf32>
      %c0_53 = arith.constant 0 : index
      %c0_54 = arith.constant 0 : index
      %87 = vector.load %arg8[%c0_53, %c0_54] : memref<8x64xf32, #tpu.memory_space<vmem>>, vector<8x64xf32>
      tpu.vector_store %arg8[%c0_53, %c0_54], %86 {strides = array<i32>} : memref<8x64xf32, #tpu.memory_space<vmem>>, vector<8x64xf32>,
    } else {
    }
    %c8_i32 = arith.constant 8 : i32
    %3 = arith.muli %arg1, %c8_i32 : i32
    %4 = tpu.assume_multiple %3, 8 : i32
    %c0 = arith.constant 0 : index
    %5 = arith.index_cast %4 : i32 to index
    %c0_1 = arith.constant 0 : index
    %6 = vector.load %arg2[%c0, %5, %c0_1] : memref<1x8x32xf32, #tpu.memory_space<vmem>>, vector<1x8x32xf32>
    %7 = vector.shape_cast %6 : vector<1x8x32xf32> to vector<8x32xf32>
    %c0_2 = arith.constant 0 : index
    %c0_3 = arith.constant 0 : index
    %8 = vector.load %arg3[%c0_2, %c0_3] : memref<32x32xf32, #tpu.memory_space<vmem>>, vector<32x32xf32>
    %cst = arith.constant dense<0.000000e+00> : vector<8x32xf32>
    %9 = tpu.matmul %7, %8, %cst {dimension_numbers = #tpu.dot_dimension_numbers<[1], [0], [0], [1], [0, 0, 1, 1], [], []>} : vector<8x32xf32>, vector<32x32xf32>, vector<8x32xf32> -> vector<8x32xf32>
    %10 = vector.extract_strided_slice %9 {offsets = [0, 0], sizes = [8, 8], strides = [1, 1]} : vector<8x32xf32> to vector<8x8xf32>
    %c0_4 = arith.constant 0 : index
    %c0_5 = arith.constant 0 : index
    %11 = vector.load %arg8[%c0_4, %c0_5] : memref<8x64xf32, #tpu.memory_space<vmem>>, vector<8x8xf32>
    %c0_6 = arith.constant 0 : index
    %c32 = arith.constant 32 : index
    %12 = vector.load %arg8[%c0_6, %c32] : memref<8x64xf32, #tpu.memory_space<vmem>>, vector<8x8xf32>
    %cst_7 = arith.constant dense<0.000000e+00> : vector<8x8xf32>
    %13 = tpu.matmul %10, %11, %cst_7 {dimension_numbers = #tpu.dot_dimension_numbers<[1], [1], [0], [0], [0, 0, 1, 0], [], []>} : vector<8x8xf32>, vector<8x8xf32>, vector<8x8xf32> -> vector<8x8xf32>
    %cst_8 = arith.constant dense<0xFF800000> : vector<8xf32>
    %14 = vector.multi_reduction <maximumf>, %13, %cst_8 [1] : vector<8x8xf32> to vector<8xf32>
    %15 = vector.shape_cast %14 : vector<8xf32> to vector<8x1xf32>
    %16 = vector.broadcast %15 : vector<8x1xf32> to vector<8x8xf32>
    %17 = arith.subf %13, %16 : vector<8x8xf32>
    %18 = math.exp %17 : vector<8x8xf32>
    %cst_9 = arith.constant dense<0.000000e+00> : vector<8xf32>
    %19 = vector.multi_reduction <add>, %18, %cst_9 [1] : vector<8x8xf32> to vector<8xf32>
    %20 = vector.shape_cast %19 : vector<8xf32> to vector<8x1xf32>
    %cst_10 = arith.constant dense<0.000000e+00> : vector<8x8xf32>
    %21 = tpu.matmul %18, %12, %cst_10 {dimension_numbers = #tpu.dot_dimension_numbers<[1], [0], [0], [1], [0, 0, 1, 1], [], []>} : vector<8x8xf32>, vector<8x8xf32>, vector<8x8xf32> -> vector<8x8xf32>
    %22 = tpu.reciprocal %20 : vector<8x1xf32> -> vector<8x1xf32>
    %23 = vector.broadcast %22 : vector<8x1xf32> to vector<8x8xf32>
    %24 = arith.mulf %21, %23 : vector<8x8xf32>
    %c0_11 = arith.constant 0 : index
    %c0_12 = arith.constant 0 : index
    %25 = vector.load %arg9[%c0_11, %c0_12] : memref<8x32xf32, #tpu.memory_space<vmem>>, vector<8x8xf32>
    tpu.vector_store %arg9[%c0_11, %c0_12], %24 {strides = array<i32>} : memref<8x32xf32, #tpu.memory_space<vmem>>, vector<8x8xf32>,
    %26 = vector.extract_strided_slice %9 {offsets = [0, 8], sizes = [8, 8], strides = [1, 1]} : vector<8x32xf32> to vector<8x8xf32>
    %c0_13 = arith.constant 0 : index
    %c8 = arith.constant 8 : index
    %27 = vector.load %arg8[%c0_13, %c8] : memref<8x64xf32, #tpu.memory_space<vmem>>, vector<8x8xf32>
    %c0_14 = arith.constant 0 : index
    %c40 = arith.constant 40 : index
    %28 = vector.load %arg8[%c0_14, %c40] : memref<8x64xf32, #tpu.memory_space<vmem>>, vector<8x8xf32>
    %cst_15 = arith.constant dense<0.000000e+00> : vector<8x8xf32>
    %29 = tpu.matmul %26, %27, %cst_15 {dimension_numbers = #tpu.dot_dimension_numbers<[1], [1], [0], [0], [0, 0, 1, 0], [], []>} : vector<8x8xf32>, vector<8x8xf32>, vector<8x8xf32> -> vector<8x8xf32>
    %cst_16 = arith.constant dense<0xFF800000> : vector<8xf32>
    %30 = vector.multi_reduction <maximumf>, %29, %cst_16 [1] : vector<8x8xf32> to vector<8xf32>
    %31 = vector.shape_cast %30 : vector<8xf32> to vector<8x1xf32>
    %32 = vector.broadcast %31 : vector<8x1xf32> to vector<8x8xf32>
    %33 = arith.subf %29, %32 : vector<8x8xf32>
    %34 = math.exp %33 : vector<8x8xf32>
    %cst_17 = arith.constant dense<0.000000e+00> : vector<8xf32>
    %35 = vector.multi_reduction <add>, %34, %cst_17 [1] : vector<8x8xf32> to vector<8xf32>
    %36 = vector.shape_cast %35 : vector<8xf32> to vector<8x1xf32>
    %cst_18 = arith.constant dense<0.000000e+00> : vector<8x8xf32>
    %37 = tpu.matmul %34, %28, %cst_18 {dimension_numbers = #tpu.dot_dimension_numbers<[1], [0], [0], [1], [0, 0, 1, 1], [], []>} : vector<8x8xf32>, vector<8x8xf32>, vector<8x8xf32> -> vector<8x8xf32>
    %38 = tpu.reciprocal %36 : vector<8x1xf32> -> vector<8x1xf32>
    %39 = vector.broadcast %38 : vector<8x1xf32> to vector<8x8xf32>
    %40 = arith.mulf %37, %39 : vector<8x8xf32>
    %c0_19 = arith.constant 0 : index
    %c8_20 = arith.constant 8 : index
    %41 = vector.load %arg9[%c0_19, %c8_20] : memref<8x32xf32, #tpu.memory_space<vmem>>, vector<8x8xf32>
    tpu.vector_store %arg9[%c0_19, %c8_20], %40 {strides = array<i32>} : memref<8x32xf32, #tpu.memory_space<vmem>>, vector<8x8xf32>,
    %42 = vector.extract_strided_slice %9 {offsets = [0, 16], sizes = [8, 8], strides = [1, 1]} : vector<8x32xf32> to vector<8x8xf32>
    %c0_21 = arith.constant 0 : index
    %c16 = arith.constant 16 : index
    %43 = vector.load %arg8[%c0_21, %c16] : memref<8x64xf32, #tpu.memory_space<vmem>>, vector<8x8xf32>
    %c0_22 = arith.constant 0 : index
    %c48 = arith.constant 48 : index
    %44 = vector.load %arg8[%c0_22, %c48] : memref<8x64xf32, #tpu.memory_space<vmem>>, vector<8x8xf32>
    %cst_23 = arith.constant dense<0.000000e+00> : vector<8x8xf32>
    %45 = tpu.matmul %42, %43, %cst_23 {dimension_numbers = #tpu.dot_dimension_numbers<[1], [1], [0], [0], [0, 0, 1, 0], [], []>} : vector<8x8xf32>, vector<8x8xf32>, vector<8x8xf32> -> vector<8x8xf32>
    %cst_24 = arith.constant dense<0xFF800000> : vector<8xf32>
    %46 = vector.multi_reduction <maximumf>, %45, %cst_24 [1] : vector<8x8xf32> to vector<8xf32>
    %47 = vector.shape_cast %46 : vector<8xf32> to vector<8x1xf32>
    %48 = vector.broadcast %47 : vector<8x1xf32> to vector<8x8xf32>
    %49 = arith.subf %45, %48 : vector<8x8xf32>
    %50 = math.exp %49 : vector<8x8xf32>
    %cst_25 = arith.constant dense<0.000000e+00> : vector<8xf32>
    %51 = vector.multi_reduction <add>, %50, %cst_25 [1] : vector<8x8xf32> to vector<8xf32>
    %52 = vector.shape_cast %51 : vector<8xf32> to vector<8x1xf32>
    %cst_26 = arith.constant dense<0.000000e+00> : vector<8x8xf32>
    %53 = tpu.matmul %50, %44, %cst_26 {dimension_numbers = #tpu.dot_dimension_numbers<[1], [0], [0], [1], [0, 0, 1, 1], [], []>} : vector<8x8xf32>, vector<8x8xf32>, vector<8x8xf32> -> vector<8x8xf32>
    %54 = tpu.reciprocal %52 : vector<8x1xf32> -> vector<8x1xf32>
    %55 = vector.broadcast %54 : vector<8x1xf32> to vector<8x8xf32>
    %56 = arith.mulf %53, %55 : vector<8x8xf32>
    %c0_27 = arith.constant 0 : index
    %c16_28 = arith.constant 16 : index
    %57 = vector.load %arg9[%c0_27, %c16_28] : memref<8x32xf32, #tpu.memory_space<vmem>>, vector<8x8xf32>
    tpu.vector_store %arg9[%c0_27, %c16_28], %56 {strides = array<i32>} : memref<8x32xf32, #tpu.memory_space<vmem>>, vector<8x8xf32>,
    %58 = vector.extract_strided_slice %9 {offsets = [0, 24], sizes = [8, 8], strides = [1, 1]} : vector<8x32xf32> to vector<8x8xf32>
    %c0_29 = arith.constant 0 : index
    %c24 = arith.constant 24 : index
    %59 = vector.load %arg8[%c0_29, %c24] : memref<8x64xf32, #tpu.memory_space<vmem>>, vector<8x8xf32>
    %c0_30 = arith.constant 0 : index
    %c56 = arith.constant 56 : index
    %60 = vector.load %arg8[%c0_30, %c56] : memref<8x64xf32, #tpu.memory_space<vmem>>, vector<8x8xf32>
    %cst_31 = arith.constant dense<0.000000e+00> : vector<8x8xf32>
    %61 = tpu.matmul %58, %59, %cst_31 {dimension_numbers = #tpu.dot_dimension_numbers<[1], [1], [0], [0], [0, 0, 1, 0], [], []>} : vector<8x8xf32>, vector<8x8xf32>, vector<8x8xf32> -> vector<8x8xf32>
    %cst_32 = arith.constant dense<0xFF800000> : vector<8xf32>
    %62 = vector.multi_reduction <maximumf>, %61, %cst_32 [1] : vector<8x8xf32> to vector<8xf32>
    %63 = vector.shape_cast %62 : vector<8xf32> to vector<8x1xf32>
    %64 = vector.broadcast %63 : vector<8x1xf32> to vector<8x8xf32>
    %65 = arith.subf %61, %64 : vector<8x8xf32>
    %66 = math.exp %65 : vector<8x8xf32>
    %cst_33 = arith.constant dense<0.000000e+00> : vector<8xf32>
    %67 = vector.multi_reduction <add>, %66, %cst_33 [1] : vector<8x8xf32> to vector<8xf32>
    %68 = vector.shape_cast %67 : vector<8xf32> to vector<8x1xf32>
    %cst_34 = arith.constant dense<0.000000e+00> : vector<8x8xf32>
    %69 = tpu.matmul %66, %60, %cst_34 {dimension_numbers = #tpu.dot_dimension_numbers<[1], [0], [0], [1], [0, 0, 1, 1], [], []>} : vector<8x8xf32>, vector<8x8xf32>, vector<8x8xf32> -> vector<8x8xf32>
    %70 = tpu.reciprocal %68 : vector<8x1xf32> -> vector<8x1xf32>
    %71 = vector.broadcast %70 : vector<8x1xf32> to vector<8x8xf32>
    %72 = arith.mulf %69, %71 : vector<8x8xf32>
    %c0_35 = arith.constant 0 : index
    %c24_36 = arith.constant 24 : index
    %73 = vector.load %arg9[%c0_35, %c24_36] : memref<8x32xf32, #tpu.memory_space<vmem>>, vector<8x8xf32>
    tpu.vector_store %arg9[%c0_35, %c24_36], %72 {strides = array<i32>} : memref<8x32xf32, #tpu.memory_space<vmem>>, vector<8x8xf32>,
    %c0_37 = arith.constant 0 : index
    %c0_38 = arith.constant 0 : index
    %74 = vector.load %arg9[%c0_37, %c0_38] : memref<8x32xf32, #tpu.memory_space<vmem>>, vector<8x32xf32>
    %c0_39 = arith.constant 0 : index
    %c0_40 = arith.constant 0 : index
    %75 = vector.load %arg5[%c0_39, %c0_40] : memref<32x32xf32, #tpu.memory_space<vmem>>, vector<32x32xf32>
    %cst_41 = arith.constant dense<0.000000e+00> : vector<8x32xf32>
    %76 = tpu.matmul %74, %75, %cst_41 {dimension_numbers = #tpu.dot_dimension_numbers<[1], [0], [0], [1], [0, 0, 1, 1], [], []>} : vector<8x32xf32>, vector<32x32xf32>, vector<8x32xf32> -> vector<8x32xf32>
    %c0_42 = arith.constant 0 : index
    %c0_43 = arith.constant 0 : index
    %77 = vector.load %arg6[%c0_42, %c0_43] : memref<1x32xf32, #tpu.memory_space<vmem>>, vector<1x32xf32>
    %78 = vector.broadcast %77 : vector<1x32xf32> to vector<8x32xf32>
    %79 = arith.addf %76, %78 : vector<8x32xf32>
    %c0_44 = arith.constant 0 : index
    %c0_45 = arith.constant 0 : index
    %c0_46 = arith.constant 0 : index
    %80 = vector.load %arg7[%c0_44, %c0_45, %c0_46] : memref<1x8x32xf32, #tpu.memory_space<vmem>>, vector<1x8x32xf32>
    %81 = vector.shape_cast %80 : vector<1x8x32xf32> to vector<8x32xf32>
    %82 = vector.shape_cast %79 : vector<8x32xf32> to vector<1x8x32xf32>
    tpu.vector_store %arg7[%c0_44, %c0_45, %c0_46], %82 {strides = array<i32>} : memref<1x8x32xf32, #tpu.memory_space<vmem>>, vector<1x8x32xf32>,
    return
  }
  func.func @transform_0(%arg0: i32, %arg1: i32) -> (i32, i32, i32) {
    %c0_i32 = arith.constant 0 : i32
    %c0_i32_0 = arith.constant 0 : i32
    %c0_i32_1 = arith.constant 0 : i32
    return %arg0, %c0_i32, %c0_i32_0 : i32, i32, i32
  }
  func.func @transform_1(%arg0: i32, %arg1: i32) -> (i32, i32) {
    %c0_i32 = arith.constant 0 : i32
    %c0_i32_0 = arith.constant 0 : i32
    %c0_i32_1 = arith.constant 0 : i32
    return %c0_i32, %c0_i32_0 : i32, i32
  }
  func.func @transform_2(%arg0: i32, %arg1: i32) -> (i32, i32) {
    %c0_i32 = arith.constant 0 : i32
    %c0_i32_0 = arith.constant 0 : i32
    %c0_i32_1 = arith.constant 0 : i32
    return %c0_i32, %c0_i32_0 : i32, i32
  }
  func.func @transform_3(%arg0: i32, %arg1: i32) -> (i32, i32) {
    %c0_i32 = arith.constant 0 : i32
    %c0_i32_0 = arith.constant 0 : i32
    %c0_i32_1 = arith.constant 0 : i32
    return %c0_i32, %c0_i32_0 : i32, i32
  }
  func.func @transform_4(%arg0: i32, %arg1: i32) -> (i32, i32) {
    %c0_i32 = arith.constant 0 : i32
    %c0_i32_0 = arith.constant 0 : i32
    %c0_i32_1 = arith.constant 0 : i32
    return %c0_i32, %c0_i32_0 : i32, i32
  }
  func.func @transform_5(%arg0: i32, %arg1: i32) -> (i32, i32, i32) {
    %c0_i32 = arith.constant 0 : i32
    %c0_i32_0 = arith.constant 0 : i32
    return %arg0, %arg1, %c0_i32 : i32, i32, i32
  }
}

module attributes {stable_mosaic.version = 11 : i64} {
  func.func @kernel(%arg0: i32, %arg1: i32, %arg2: memref<1x8x32xf32, #tpu.memory_space<vmem>>, %arg3: memref<32x32xf32, #tpu.memory_space<vmem>>, %arg4: memref<32x64xf32, #tpu.memory_space<vmem>>, %arg5: memref<32x32xf32, #tpu.memory_space<vmem>>, %arg6: memref<1x32xf32, #tpu.memory_space<vmem>>, %arg7: memref<1x8x32xf32, #tpu.memory_space<vmem>>, %arg8: memref<8x64xf32, #tpu.memory_space<vmem>>, %arg9: memref<8x32xf32, #tpu.memory_space<vmem>>) attributes {dimension_semantics = [#tpu.dimension_semantics<parallel>, #tpu.dimension_semantics<arbitrary>], iteration_bounds = array<i64: 2, 1>, scalar_prefetch = 0 : i64, scratch_operands = 2 : i64, tpu.core_type = #tpu.core_type<tc>, window_params = [{transform_indices = @transform_0, window_bounds = array<i64: 1, 8, 32>}, {pipeline_mode = #tpu.pipeline_mode<synchronous>, transform_indices = @transform_1, window_bounds = array<i64: 32, 32>}, {pipeline_mode = #tpu.pipeline_mode<synchronous>, transform_indices = @transform_2, window_bounds = array<i64: 32, 64>}, {pipeline_mode = #tpu.pipeline_mode<synchronous>, transform_indices = @transform_3, window_bounds = array<i64: 32, 32>}, {pipeline_mode = #tpu.pipeline_mode<synchronous>, transform_indices = @transform_4, window_bounds = array<i64: 1, 32>}, {transform_indices = @transform_5, window_bounds = array<i64: 1, 8, 32>}]} {
    %c0_i32 = arith.constant 0 : i32
    %0 = arith.cmpi eq, %arg1, %c0_i32 : i32
    %1 = arith.extui %0 : i1 to i32
    %c0_i32_0 = arith.constant 0 : i32
    %2 = arith.cmpi ne, %1, %c0_i32_0 : i32
    scf.if %2 {
      %c0_47 = arith.constant 0 : index
      %c0_48 = arith.constant 0 : index
      %c0_49 = arith.constant 0 : index
      %83 = vector.load %arg2[%c0_47, %c0_48, %c0_49] : memref<1x8x32xf32, #tpu.memory_space<vmem>>, vector<1x8x32xf32>
      %84 = vector.shape_cast %83 : vector<1x8x32xf32> to vector<8x32xf32>
      %c0_50 = arith.constant 0 : index
      %c0_51 = arith.constant 0 : index
      %85 = vector.load %arg4[%c0_50, %c0_51] : memref<32x64xf32, #tpu.memory_space<vmem>>, vector<32x64xf32>
      %cst_52 = arith.constant dense<0.000000e+00> : vector<8x64xf32>
      %86 = tpu.matmul %84, %85, %cst_52 {dimension_numbers = #tpu.dot_dimension_numbers<[1], [0], [0], [1], [0, 0, 1, 1], [], []>} : vector<8x32xf32>, vector<32x64xf32>, vector<8x64xf32> -> vector<8x64xf32>
      %c0_53 = arith.constant 0 : index
      %c0_54 = arith.constant 0 : index
      %87 = vector.load %arg8[%c0_53, %c0_54] : memref<8x64xf32, #tpu.memory_space<vmem>>, vector<8x64xf32>
      tpu.vector_store %arg8[%c0_53, %c0_54], %86 {strides = array<i32>} : memref<8x64xf32, #tpu.memory_space<vmem>>, vector<8x64xf32>,
    } else {
    }
    %c8_i32 = arith.constant 8 : i32
    %3 = arith.muli %arg1, %c8_i32 : i32
    %4 = tpu.assume_multiple %3, 8 : i32
    %c0 = arith.constant 0 : index
    %5 = arith.index_cast %4 : i32 to index
    %c0_1 = arith.constant 0 : index
    %6 = vector.load %arg2[%c0, %5, %c0_1] : memref<1x8x32xf32, #tpu.memory_space<vmem>>, vector<1x8x32xf32>
    %7 = vector.shape_cast %6 : vector<1x8x32xf32> to vector<8x32xf32>
    %c0_2 = arith.constant 0 : index
    %c0_3 = arith.constant 0 : index
    %8 = vector.load %arg3[%c0_2, %c0_3] : memref<32x32xf32, #tpu.memory_space<vmem>>, vector<32x32xf32>
    %cst = arith.constant dense<0.000000e+00> : vector<8x32xf32>
    %9 = tpu.matmul %7, %8, %cst {dimension_numbers = #tpu.dot_dimension_numbers<[1], [0], [0], [1], [0, 0, 1, 1], [], []>} : vector<8x32xf32>, vector<32x32xf32>, vector<8x32xf32> -> vector<8x32xf32>
    %10 = vector.extract_strided_slice %9 {offsets = [0, 0], sizes = [8, 8], strides = [1, 1]} : vector<8x32xf32> to vector<8x8xf32>
    %c0_4 = arith.constant 0 : index
    %c0_5 = arith.constant 0 : index
    %11 = vector.load %arg8[%c0_4, %c0_5] : memref<8x64xf32, #tpu.memory_space<vmem>>, vector<8x8xf32>
    %c0_6 = arith.constant 0 : index
    %c32 = arith.constant 32 : index
    %12 = vector.load %arg8[%c0_6, %c32] : memref<8x64xf32, #tpu.memory_space<vmem>>, vector<8x8xf32>
    %cst_7 = arith.constant dense<0.000000e+00> : vector<8x8xf32>
    %13 = tpu.matmul %10, %11, %cst_7 {dimension_numbers = #tpu.dot_dimension_numbers<[1], [1], [0], [0], [0, 0, 1, 0], [], []>} : vector<8x8xf32>, vector<8x8xf32>, vector<8x8xf32> -> vector<8x8xf32>
    %cst_8 = arith.constant dense<0xFF800000> : vector<8xf32>
    %14 = vector.multi_reduction <maximumf>, %13, %cst_8 [1] : vector<8x8xf32> to vector<8xf32>
    %15 = vector.shape_cast %14 : vector<8xf32> to vector<8x1xf32>
    %16 = vector.broadcast %15 : vector<8x1xf32> to vector<8x8xf32>
    %17 = arith.subf %13, %16 : vector<8x8xf32>
    %18 = math.exp %17 : vector<8x8xf32>
    %cst_9 = arith.constant dense<0.000000e+00> : vector<8xf32>
    %19 = vector.multi_reduction <add>, %18, %cst_9 [1] : vector<8x8xf32> to vector<8xf32>
    %20 = vector.shape_cast %19 : vector<8xf32> to vector<8x1xf32>
    %cst_10 = arith.constant dense<0.000000e+00> : vector<8x8xf32>
    %21 = tpu.matmul %18, %12, %cst_10 {dimension_numbers = #tpu.dot_dimension_numbers<[1], [0], [0], [1], [0, 0, 1, 1], [], []>} : vector<8x8xf32>, vector<8x8xf32>, vector<8x8xf32> -> vector<8x8xf32>
    %22 = tpu.reciprocal %20 : vector<8x1xf32> -> vector<8x1xf32>
    %23 = vector.broadcast %22 : vector<8x1xf32> to vector<8x8xf32>
    %24 = arith.mulf %21, %23 : vector<8x8xf32>
    %c0_11 = arith.constant 0 : index
    %c0_12 = arith.constant 0 : index
    %25 = vector.load %arg9[%c0_11, %c0_12] : memref<8x32xf32, #tpu.memory_space<vmem>>, vector<8x8xf32>
    tpu.vector_store %arg9[%c0_11, %c0_12], %24 {strides = array<i32>} : memref<8x32xf32, #tpu.memory_space<vmem>>, vector<8x8xf32>,
    %26 = vector.extract_strided_slice %9 {offsets = [0, 8], sizes = [8, 8], strides = [1, 1]} : vector<8x32xf32> to vector<8x8xf32>
    %c0_13 = arith.constant 0 : index
    %c8 = arith.constant 8 : index
    %27 = vector.load %arg8[%c0_13, %c8] : memref<8x64xf32, #tpu.memory_space<vmem>>, vector<8x8xf32>
    %c0_14 = arith.constant 0 : index
    %c40 = arith.constant 40 : index
    %28 = vector.load %arg8[%c0_14, %c40] : memref<8x64xf32, #tpu.memory_space<vmem>>, vector<8x8xf32>
    %cst_15 = arith.constant dense<0.000000e+00> : vector<8x8xf32>
    %29 = tpu.matmul %26, %27, %cst_15 {dimension_numbers = #tpu.dot_dimension_numbers<[1], [1], [0], [0], [0, 0, 1, 0], [], []>} : vector<8x8xf32>, vector<8x8xf32>, vector<8x8xf32> -> vector<8x8xf32>
    %cst_16 = arith.constant dense<0xFF800000> : vector<8xf32>
    %30 = vector.multi_reduction <maximumf>, %29, %cst_16 [1] : vector<8x8xf32> to vector<8xf32>
    %31 = vector.shape_cast %30 : vector<8xf32> to vector<8x1xf32>
    %32 = vector.broadcast %31 : vector<8x1xf32> to vector<8x8xf32>
    %33 = arith.subf %29, %32 : vector<8x8xf32>
    %34 = math.exp %33 : vector<8x8xf32>
    %cst_17 = arith.constant dense<0.000000e+00> : vector<8xf32>
    %35 = vector.multi_reduction <add>, %34, %cst_17 [1] : vector<8x8xf32> to vector<8xf32>
    %36 = vector.shape_cast %35 : vector<8xf32> to vector<8x1xf32>
    %cst_18 = arith.constant dense<0.000000e+00> : vector<8x8xf32>
    %37 = tpu.matmul %34, %28, %cst_18 {dimension_numbers = #tpu.dot_dimension_numbers<[1], [0], [0], [1], [0, 0, 1, 1], [], []>} : vector<8x8xf32>, vector<8x8xf32>, vector<8x8xf32> -> vector<8x8xf32>
    %38 = tpu.reciprocal %36 : vector<8x1xf32> -> vector<8x1xf32>
    %39 = vector.broadcast %38 : vector<8x1xf32> to vector<8x8xf32>
    %40 = arith.mulf %37, %39 : vector<8x8xf32>
    %c0_19 = arith.constant 0 : index
    %c8_20 = arith.constant 8 : index
    %41 = vector.load %arg9[%c0_19, %c8_20] : memref<8x32xf32, #tpu.memory_space<vmem>>, vector<8x8xf32>
    tpu.vector_store %arg9[%c0_19, %c8_20], %40 {strides = array<i32>} : memref<8x32xf32, #tpu.memory_space<vmem>>, vector<8x8xf32>,
    %42 = vector.extract_strided_slice %9 {offsets = [0, 16], sizes = [8, 8], strides = [1, 1]} : vector<8x32xf32> to vector<8x8xf32>
    %c0_21 = arith.constant 0 : index
    %c16 = arith.constant 16 : index
    %43 = vector.load %arg8[%c0_21, %c16] : memref<8x64xf32, #tpu.memory_space<vmem>>, vector<8x8xf32>
    %c0_22 = arith.constant 0 : index
    %c48 = arith.constant 48 : index
    %44 = vector.load %arg8[%c0_22, %c48] : memref<8x64xf32, #tpu.memory_space<vmem>>, vector<8x8xf32>
    %cst_23 = arith.constant dense<0.000000e+00> : vector<8x8xf32>
    %45 = tpu.matmul %42, %43, %cst_23 {dimension_numbers = #tpu.dot_dimension_numbers<[1], [1], [0], [0], [0, 0, 1, 0], [], []>} : vector<8x8xf32>, vector<8x8xf32>, vector<8x8xf32> -> vector<8x8xf32>
    %cst_24 = arith.constant dense<0xFF800000> : vector<8xf32>
    %46 = vector.multi_reduction <maximumf>, %45, %cst_24 [1] : vector<8x8xf32> to vector<8xf32>
    %47 = vector.shape_cast %46 : vector<8xf32> to vector<8x1xf32>
    %48 = vector.broadcast %47 : vector<8x1xf32> to vector<8x8xf32>
    %49 = arith.subf %45, %48 : vector<8x8xf32>
    %50 = math.exp %49 : vector<8x8xf32>
    %cst_25 = arith.constant dense<0.000000e+00> : vector<8xf32>
    %51 = vector.multi_reduction <add>, %50, %cst_25 [1] : vector<8x8xf32> to vector<8xf32>
    %52 = vector.shape_cast %51 : vector<8xf32> to vector<8x1xf32>
    %cst_26 = arith.constant dense<0.000000e+00> : vector<8x8xf32>
    %53 = tpu.matmul %50, %44, %cst_26 {dimension_numbers = #tpu.dot_dimension_numbers<[1], [0], [0], [1], [0, 0, 1, 1], [], []>} : vector<8x8xf32>, vector<8x8xf32>, vector<8x8xf32> -> vector<8x8xf32>
    %54 = tpu.reciprocal %52 : vector<8x1xf32> -> vector<8x1xf32>
    %55 = vector.broadcast %54 : vector<8x1xf32> to vector<8x8xf32>
    %56 = arith.mulf %53, %55 : vector<8x8xf32>
    %c0_27 = arith.constant 0 : index
    %c16_28 = arith.constant 16 : index
    %57 = vector.load %arg9[%c0_27, %c16_28] : memref<8x32xf32, #tpu.memory_space<vmem>>, vector<8x8xf32>
    tpu.vector_store %arg9[%c0_27, %c16_28], %56 {strides = array<i32>} : memref<8x32xf32, #tpu.memory_space<vmem>>, vector<8x8xf32>,
    %58 = vector.extract_strided_slice %9 {offsets = [0, 24], sizes = [8, 8], strides = [1, 1]} : vector<8x32xf32> to vector<8x8xf32>
    %c0_29 = arith.constant 0 : index
    %c24 = arith.constant 24 : index
    %59 = vector.load %arg8[%c0_29, %c24] : memref<8x64xf32, #tpu.memory_space<vmem>>, vector<8x8xf32>
    %c0_30 = arith.constant 0 : index
    %c56 = arith.constant 56 : index
    %60 = vector.load %arg8[%c0_30, %c56] : memref<8x64xf32, #tpu.memory_space<vmem>>, vector<8x8xf32>
    %cst_31 = arith.constant dense<0.000000e+00> : vector<8x8xf32>
    %61 = tpu.matmul %58, %59, %cst_31 {dimension_numbers = #tpu.dot_dimension_numbers<[1], [1], [0], [0], [0, 0, 1, 0], [], []>} : vector<8x8xf32>, vector<8x8xf32>, vector<8x8xf32> -> vector<8x8xf32>
    %cst_32 = arith.constant dense<0xFF800000> : vector<8xf32>
    %62 = vector.multi_reduction <maximumf>, %61, %cst_32 [1] : vector<8x8xf32> to vector<8xf32>
    %63 = vector.shape_cast %62 : vector<8xf32> to vector<8x1xf32>
    %64 = vector.broadcast %63 : vector<8x1xf32> to vector<8x8xf32>
    %65 = arith.subf %61, %64 : vector<8x8xf32>
    %66 = math.exp %65 : vector<8x8xf32>
    %cst_33 = arith.constant dense<0.000000e+00> : vector<8xf32>
    %67 = vector.multi_reduction <add>, %66, %cst_33 [1] : vector<8x8xf32> to vector<8xf32>
    %68 = vector.shape_cast %67 : vector<8xf32> to vector<8x1xf32>
    %cst_34 = arith.constant dense<0.000000e+00> : vector<8x8xf32>
    %69 = tpu.matmul %66, %60, %cst_34 {dimension_numbers = #tpu.dot_dimension_numbers<[1], [0], [0], [1], [0, 0, 1, 1], [], []>} : vector<8x8xf32>, vector<8x8xf32>, vector<8x8xf32> -> vector<8x8xf32>
    %70 = tpu.reciprocal %68 : vector<8x1xf32> -> vector<8x1xf32>
    %71 = vector.broadcast %70 : vector<8x1xf32> to vector<8x8xf32>
    %72 = arith.mulf %69, %71 : vector<8x8xf32>
    %c0_35 = arith.constant 0 : index
    %c24_36 = arith.constant 24 : index
    %73 = vector.load %arg9[%c0_35, %c24_36] : memref<8x32xf32, #tpu.memory_space<vmem>>, vector<8x8xf32>
    tpu.vector_store %arg9[%c0_35, %c24_36], %72 {strides = array<i32>} : memref<8x32xf32, #tpu.memory_space<vmem>>, vector<8x8xf32>,
    %c0_37 = arith.constant 0 : index
    %c0_38 = arith.constant 0 : index
    %74 = vector.load %arg9[%c0_37, %c0_38] : memref<8x32xf32, #tpu.memory_space<vmem>>, vector<8x32xf32>
    %c0_39 = arith.constant 0 : index
    %c0_40 = arith.constant 0 : index
    %75 = vector.load %arg5[%c0_39, %c0_40] : memref<32x32xf32, #tpu.memory_space<vmem>>, vector<32x32xf32>
    %cst_41 = arith.constant dense<0.000000e+00> : vector<8x32xf32>
    %76 = tpu.matmul %74, %75, %cst_41 {dimension_numbers = #tpu.dot_dimension_numbers<[1], [0], [0], [1], [0, 0, 1, 1], [], []>} : vector<8x32xf32>, vector<32x32xf32>, vector<8x32xf32> -> vector<8x32xf32>
    %c0_42 = arith.constant 0 : index
    %c0_43 = arith.constant 0 : index
    %77 = vector.load %arg6[%c0_42, %c0_43] : memref<1x32xf32, #tpu.memory_space<vmem>>, vector<1x32xf32>
    %78 = vector.broadcast %77 : vector<1x32xf32> to vector<8x32xf32>
    %79 = arith.addf %76, %78 : vector<8x32xf32>
    %c0_44 = arith.constant 0 : index
    %c0_45 = arith.constant 0 : index
    %c0_46 = arith.constant 0 : index
    %80 = vector.load %arg7[%c0_44, %c0_45, %c0_46] : memref<1x8x32xf32, #tpu.memory_space<vmem>>, vector<1x8x32xf32>
    %81 = vector.shape_cast %80 : vector<1x8x32xf32> to vector<8x32xf32>
    %82 = vector.shape_cast %79 : vector<8x32xf32> to vector<1x8x32xf32>
    tpu.vector_store %arg7[%c0_44, %c0_45, %c0_46], %82 {strides = array<i32>} : memref<1x8x32xf32, #tpu.memory_space<vmem>>, vector<1x8x32xf32>,
    return
  }
  func.func @transform_0(%arg0: i32, %arg1: i32) -> (i32, i32, i32) {
    %c0_i32 = arith.constant 0 : i32
    %c0_i32_0 = arith.constant 0 : i32
    %c0_i32_1 = arith.constant 0 : i32
    return %arg0, %c0_i32, %c0_i32_0 : i32, i32, i32
  }
  func.func @transform_1(%arg0: i32, %arg1: i32) -> (i32, i32) {
    %c0_i32 = arith.constant 0 : i32
    %c0_i32_0 = arith.constant 0 : i32
    %c0_i32_1 = arith.constant 0 : i32
    return %c0_i32, %c0_i32_0 : i32, i32
  }
  func.func @transform_2(%arg0: i32, %arg1: i32) -> (i32, i32) {
    %c0_i32 = arith.constant 0 : i32
    %c0_i32_0 = arith.constant 0 : i32
    %c0_i32_1 = arith.constant 0 : i32
    return %c0_i32, %c0_i32_0 : i32, i32
  }
  func.func @transform_3(%arg0: i32, %arg1: i32) -> (i32, i32) {
    %c0_i32 = arith.constant 0 : i32
    %c0_i32_0 = arith.constant 0 : i32
    %c0_i32_1 = arith.constant 0 : i32
    return %c0_i32, %c0_i32_0 : i32, i32
  }
  func.func @transform_4(%arg0: i32, %arg1: i32) -> (i32, i32) {
    %c0_i32 = arith.constant 0 : i32
    %c0_i32_0 = arith.constant 0 : i32
    %c0_i32_1 = arith.constant 0 : i32
    return %c0_i32, %c0_i32_0 : i32, i32
  }
  func.func @transform_5(%arg0: i32, %arg1: i32) -> (i32, i32, i32) {
    %c0_i32 = arith.constant 0 : i32
    %c0_i32_0 = arith.constant 0 : i32
    return %arg0, %arg1, %c0_i32 : i32, i32, i32
  }
}

</mosaic_0001>

<bundles_post_ra>
// kernel: tpu_custom_call.1
= control target key start
LH: loop header
LB: loop body
LE: loop exit
PB: predicated region body
PF: predicated region fallthrough
CT: control target
= control target key end

     0   :  { %s2189_s0 = inlined_call_operand.hbm [shape: f32[2,8,32], index: 0, kind: input, shape index: {}]   ;;  %s2190_s1 = inlined_call_operand.hbm [shape: f32[32,32], index: 1, kind: input, shape index: {}]   ;;  %s2191_s2 = inlined_call_operand.hbm [shape: f32[32,64], index: 2, kind: input, shape index: {}]   ;;  %s2192_s3 = inlined_call_operand.hbm [shape: f32[32,32], index: 3, kind: input, shape index: {}]   ;;  %s2193_s4 = inlined_call_operand.vmem [shape: f32[1,32], index: 4, kind: input, shape index: {}]   ;;  %s2194_s5 = inlined_call_operand.hbm [shape: f32[2,8,32], index: 5, kind: output, shape index: {}]  }
   0x1   :  { %2214 = sst [smem:[#allocation19_spill]] %s2189_s0 }
   0x2   :  { %2215 = sst [smem:[#allocation20_spill]] %s2190_s1 }
   0x3   :  { %10 = vsyncpa [#allocation5], 0 }
   0x4   :  { %11 = vsyncpa [#allocation8], 0 }
   0x5   :  { %12 = vsyncpa [#allocation11], 0 }
   0x6   :  { %13 = vsyncpa [#allocation6], 0 }
   0x7   :  { %15 = vsyncpa [#allocation6 + $0x1], 0  ;;  %s1867_s18 = smov 0   ;;  %s1869_s19 = smov 0  }
   0x8   :  { %s1871_s20 = smov 0   ;;  %s1873_s21 = smov 0  }
   0x9   :  { %s1875_s22 = smov 0   ;;  %s1877_s23 = smov 0  }
   0xa LB: > { %2216 = sst [smem:[#allocation17_spill]] %s1811_s22  ;;  %s1817_s24 = smov [#allocation7]   ;;  %s1815_s23 = sphi %s1877_s23, %s21_s23   ;;  %s1811_s22 = sphi %s1875_s22, %s2242_s22   ;;  %s1807_s21 = sphi %s1873_s21, %s2241_s21   ;;  %s1803_s20 = sphi %s1871_s20, %s2245_s20   ;;  %s1799_s19 = sphi %s1869_s19, %s2244_s19   ;;  %s1795_s18 = sphi %s1867_s18, %s2243_s18  }
   0xb   : > { %s201_s25 = sshll.u32 %s1817_s24, 4  ;;  %s1334_s26 = sadd.s32 4294967295, %s1815_s23   ;;  %s202_s25 = int_to_ptr.vmem [resolvable:$true] %s201_s25 }
   0xc   : > { %p1336_p0 = scmp.ge.s32.totalorder %s1815_s23, 1  ;;  %p1901_p1 = scmp.eq.s32.totalorder %s1334_s26, 0 }
   0xd   : > { %p176_p2 = scmp.lt.s32.totalorder %s1815_s23, 3  ;;  %s2220_s1 = sld [smem:[#allocation20_spill]] }
   0xe   : > { %s2217_s27 = scalar_select %p1901_p1, 1, 0 }
   0xf   : > { %p1906_p3 = pnand %p1336_p0, %p176_p2 }
  0x11   : > { %s2218_s28 = scalar_select %p1906_p3, 1, 0 }
  0x12   : > { %p2195_p4 = pneg %p1906_p3 }
  0x13   : > { %s1611_s7 = scalar_lea.hbm %s2220_s1, 512 }
  0x14   : > { %p1917_p5 = pnand %p2195_p4, %p1901_p1  ;;  %p1612_p6 = scmp.ne.s32.totalorder %s2220_s1, %s1611_s7 }
  0x15   : > { %p1618_p10 = scmp.lt.u32.totalorder %s1611_s7, %s2220_s1 }
  0x16   : > { %s2219_s29 = scalar_select %p1917_p5, 1, 0 }
  0x17   : > { %p1929_p7 = pneg %p1917_p5 }
  0x19   : > { %s2221_s10 = scalar_select %p1929_p7, 1, 0 }
  0x1a   : > { %p1614_p8 = pnand %p1929_p7, %p1612_p6 }
  0x1c   : > { %p1615_p9 = pneg %p1614_p8 }
  0x1e   : > { %p1620_p11 = pnand %p1618_p10, %p1615_p9 }
  0x20   : > { %1623 = shalt.err (!%p1620_p11)
}
  0x21   : > { %s1624_s13 = scalar_lea.vmem %s202_s25, 512  ;;  %p1632_p2 = scmp.lt.s32.totalorder %s202_s25, %s202_s25 }
  0x22   : > { %p1625_p12 = scmp.ne.s32.totalorder %s202_s25, %s1624_s13  ;;  %p1633_p4 = scmp.lt.s32.totalorder %s1624_s13, %s1624_s13 }
  0x24   : > { %p1627_p13 = pnand %p1625_p12, %p1929_p7  ;;  %p1634_p3 = por %p1633_p4, %p1632_p2 }
  0x26   : > { %p1628_p0 = pneg %p1627_p13 }
  0x28   : > { %p1635_p1 = pnand %p1634_p3, %p1628_p0 }
  0x2a   : > { %1638 = shalt.err (!%p1635_p1)
}
  0x2b   : > { %s2201_s14 = smov 128   ;;  %s2203_s15 = smov 8  }
  0x2c   : > { %1510 = dma.hbm_to_vmem [thread:$0]  (!%p1917_p5), %s2220_s1, 512, %s202_s25, [#allocation8], %s2201_s14, %s2201_s14, %s2203_s15  }
  0x2d   : > { %s1335_s24 = sadd.s32 4294967294, %s1815_s23   ;;  %s33_s30 = sadd.s32 1, %s1811_s22 }
  0x2e   : > { %p35_p1 = scmp.ge.s32.totalorder %s33_s30, 2  ;;  %s40_s6 = sadd.s32 1, %s1803_s20 }
  0x2f   : > { %p53_p3 = scmp.ne.s32.totalorder %s1799_s19, %s1795_s18  ;;  %p162_p4 = scmp.ne.s32.totalorder %s1803_s20, %s1799_s19 }
  0x30   : > { %s2247_s30 = smov (%p35_p1, %s33_s30), 0  ;;  %p2223_p6 = scmp.ne.s32.totalorder %s2217_s27, 0 }
  0x31   : > { %2222 = sst [smem:[#allocation18_spill]] %s2247_s30  ;;  %p163_p9 = scmp.eq.s32.totalorder %s1334_s26, 1 }
  0x32   : > { %p1959_p8 = por %p2223_p6, %p53_p3  ;;  %s37_s25 = ssub.s32 %s1811_s22, %s2247_s30 }
  0x33   : > { %p169_p10 = scmp.eq.s32.totalorder %s1335_s24, 1  ;;  %p38_p11 = scmp.eq.s32.totalorder %s37_s25, 0 }
  0x34   : > { %s2224_s7 = scalar_select %p1959_p8, 1, 0 }
  0x35   : > { %p1967_p12 = por %p163_p9, %p162_p4  ;;  %p1971_p13 = por %p169_p10, %p53_p3 }
  0x36   : > { %s2200_s11 = sshll.u32 %s1807_s21, 7  ;;  %s2227_s0 = sld [smem:[#allocation19_spill]] }
  0x37   : > { %s2225_s8 = scalar_select %p1967_p12, 1, 0 }
  0x38   : > { %s2226_s9 = scalar_select %p1971_p13, 1, 0 }
  0x39   : > { %s1977_s12 = scalar_select %p38_p11, %s1803_s20, %s40_s6  }
  0x3a   : > { %s1820_s26 = smov [#allocation4]   ;;  %p2228_p0 = scmp.ne.s32.totalorder %s2218_s28, 0 }
  0x3b   : > { %s191_s24 = sshll.u32 %s1820_s26, 4  ;;  %s1821_s6 = smov [#allocation9]   ;;  %s192_s24 = int_to_ptr.vmem [resolvable:$true] %s191_s24 }
  0x3c   : > { %s1984_s17 = scalar_lea.hbm %s2227_s0, %s2200_s11  ;;  %p2229_p2 = pneg %p2228_p0 }
  0x3d   : > { %s214_s13 = sshll.u32 %s1821_s6, 4  ;;  %s1639_s16 = scalar_lea.hbm %s1984_s17, 128  ;;  %s215_s13 = int_to_ptr.vmem [resolvable:$true] %s214_s13 }
  0x3e   : > { %p1991_p1 = pnand %p2229_p2, %p1959_p8  ;;  %p1640_p3 = scmp.ne.s32.totalorder %s1984_s17, %s1639_s16 }
  0x3f   : > { %s1644_s14 = scalar_lea.hbm %s2227_s0, 256  ;;  %p1645_p10 = scmp.lt.u32.totalorder %s1984_s17, %s2227_s0 }
  0x40   : > { %p1641_p4 = pneg %p1991_p1  ;;  %p1646_p11 = scmp.lt.u32.totalorder %s1644_s14, %s1639_s16 }
  0x41   : > { %p1648_p13 = scmp.lt.u32.totalorder %s1639_s16, %s1984_s17 }
  0x42   : > { %p1642_p6 = pnand %p1641_p4, %p1640_p3  ;;  %p1647_p2 = por %p1646_p11, %p1645_p10 }
  0x44   : > { %p1643_p9 = pneg %p1642_p6  ;;  %p1649_p12 = por %p1648_p13, %p1647_p2 }
  0x46   : > { %p1650_p8 = pnand %p1649_p12, %p1643_p9 }
  0x48   : > { %1653 = shalt.err (!%p1650_p8)
}
  0x49   : > { %s1654_s6 = scalar_lea.vmem %s192_s24, 128  ;;  %p1662_p5 = scmp.lt.s32.totalorder %s192_s24, %s192_s24 }
  0x4a   : > { %p1655_p0 = scmp.ne.s32.totalorder %s192_s24, %s1654_s6  ;;  %p1663_p7 = scmp.lt.s32.totalorder %s1654_s6, %s1654_s6 }
  0x4c   : > { %p1657_p3 = pnand %p1655_p0, %p1641_p4  ;;  %p1664_p10 = por %p1663_p7, %p1662_p5 }
  0x4e   : > { %p1658_p6 = pneg %p1657_p3 }
  0x50   : > { %p1665_p11 = pnand %p1664_p10, %p1658_p6 }
  0x52   : > { %1668 = shalt.err (!%p1665_p11)
}
  0x53   : > { %1507 = dma.hbm_to_vmem [thread:$0]  (!%p1991_p1), %s1984_s17, 128, %s192_s24, [#allocation5]  }
  0x54   : > { %s1669_s15 = scalar_lea.hbm %s2191_s2, 512  ;;  %p2231_p12 = scmp.ne.s32.totalorder %s2221_s10, 0 }
  0x55   : > { %p1670_p8 = scmp.ne.s32.totalorder %s2191_s2, %s1669_s15  ;;  %p1676_p5 = scmp.lt.u32.totalorder %s1669_s15, %s2191_s2 }
  0x57   : > { %p1672_p13 = pnand %p1670_p8, %p2231_p12 }
  0x59   : > { %p1673_p0 = pneg %p1672_p13 }
  0x5b   : > { %p1678_p7 = pnand %p1676_p5, %p1673_p0 }
  0x5d   : > { %1681 = shalt.err (!%p1678_p7)
}
  0x5e   : > { %s1682_s25 = scalar_lea.vmem %s215_s13, 512  ;;  %p1690_p2 = scmp.lt.s32.totalorder %s215_s13, %s215_s13 }
  0x5f   : > { %p1683_p1 = scmp.ne.s32.totalorder %s215_s13, %s1682_s25  ;;  %p1691_p3 = scmp.lt.s32.totalorder %s1682_s25, %s1682_s25 }
  0x61   : > { %p1685_p4 = pnand %p1683_p1, %p2231_p12  ;;  %p1692_p6 = por %p1691_p3, %p1690_p2 }
  0x63   : > { %p1686_p9 = pneg %p1685_p4 }
  0x65   : > { %p1693_p10 = pnand %p1692_p6, %p1686_p9 }
  0x67   : > { %1696 = shalt.err (!%p1693_p10)
}
  0x68   : > { %p2232_p11 = scmp.ne.s32.totalorder %s2219_s29, 0  ;;  %s2233_s17 = smov 8  }
  0x69   : > { %s2234_s24 = smov 128   ;;  %s1822_s15 = smov [#allocation10]  }
  0x6a   : > { %1513 = dma.hbm_to_vmem [thread:$0]  (!%p2232_p11), %s2191_s2, 512, %s215_s13, [#allocation8], %s2234_s24, %s2234_s24, %s2233_s17  }
  0x6b   : > { %s227_s11 = sshll.u32 %s1822_s15, 4  ;;  %s1697_s6 = scalar_lea.hbm %s2192_s3, 512  ;;  %s228_s11 = int_to_ptr.vmem [resolvable:$true] %s227_s11 }
  0x6c   : > { %p1698_p8 = scmp.ne.s32.totalorder %s2192_s3, %s1697_s6  ;;  %p1704_p5 = scmp.lt.u32.totalorder %s1697_s6, %s2192_s3 }
  0x6e   : > { %p1700_p13 = pnand %p1698_p8, %p2231_p12 }
  0x70   : > { %p1701_p0 = pneg %p1700_p13 }
  0x72   : > { %p1706_p7 = pnand %p1704_p5, %p1701_p0 }
  0x74   : > { %1709 = shalt.err (!%p1706_p7)
}
  0x75   : > { %s1710_s13 = scalar_lea.vmem %s228_s11, 512  ;;  %p1718_p2 = scmp.lt.s32.totalorder %s228_s11, %s228_s11 }
  0x76   : > { %p1711_p1 = scmp.ne.s32.totalorder %s228_s11, %s1710_s13  ;;  %p1719_p3 = scmp.lt.s32.totalorder %s1710_s13, %s1710_s13 }
  0x78   : > { %p1713_p4 = pnand %p1711_p1, %p2231_p12  ;;  %p1720_p6 = por %p1719_p3, %p1718_p2 }
  0x7a   : > { %p1714_p9 = pneg %p1713_p4 }
  0x7c   : > { %p1721_p10 = pnand %p1720_p6, %p1714_p9 }
  0x7e   : > { %1724 = shalt.err (!%p1721_p10)
}
  0x7f   : > { %1516 = dma.hbm_to_vmem [thread:$0]  (!%p2232_p11), %s2192_s3, 512, %s228_s11, [#allocation11], %s2234_s24, %s2234_s24, %s2233_s17  }
  0x80   : > { %p2235_p8 = scmp.ne.s32.totalorder %s2218_s28, 0 }
  0x81   : > { %p2236_p12 = scmp.ne.s32.totalorder (!%p2235_p8), %s2224_s7, 0 }
  0x82   : > { %246 = sbr.rel (%p2235_p8) target bundleno = 1437 (0x59d), region = 40 }
  0x89   : > { %1778 = dma.done.wait (%p2236_p12), [#allocation5], 128  }
  0x8a   : > { %1780 = vsyncadd (%p2236_p12), [#allocation5], 4294967168  ;;  %p2237_p13 = scmp.ne.s32.totalorder %s2217_s27, 0 }
  0x8c   : > { %1782 = dma.done.wait (%p2237_p13), [#allocation8], 1024  }
  0x8d   : > { %1784 = vsyncadd (%p2237_p13), [#allocation8], 4294966272 }
  0x8e   : > { %1786 = dma.done.wait (%p2237_p13), [#allocation11], 512  }
  0x8f   : > { %1788 = vsyncadd (%p2237_p13), [#allocation11], 4294966784  ;;  %v1823_v0 = vmov 0.0|0.0   ;;  %vm1824_vm0 = vmmov 0   ;;  %v1825_v1 = vmov 0.0   ;;  %v286_v2 = vld [vmem:[#allocation9] sm:$0xff] }
  0x90   : > { %1470 = vmatprep.subr.bf16.mxu0 %v1823_v0  ;;  %1405 = vmatprep.mubr.msk.f32.mxu0 %vm1824_vm0, %v1825_v1  ;;  %v287_v3 = vld [vmem:[#allocation9 + $0x8] sm:$0xff]  ;;  %v288_v4 = vld [vmem:[#allocation9 + $0x10] sm:$0xff]  ;;  %v289_v6 = vld [vmem:[#allocation9 + $0x18] sm:$0xff]  ;;  %vm290_vm1 = vcmask 261120   ;;  %vm364_vm2 = vcmask 523264   ;;  %vm448_vm3 = vcmask 64512  }
  0x91   : > { %1476 = vmatprep.subr.bf16.mxu1 %v1823_v0  ;;  %1416 = vmatprep.mubr.msk.f32.mxu1 %vm1824_vm0, %v1825_v1  ;;  %v1471_v5 = vpack.c.bf16 %v287_v3, %v286_v2  ;;  %v369_v7 = vld [vmem:[#allocation7] sm:$0xff]  ;;  %v370_v8 = vld [vmem:[#allocation7 + $0x8] sm:$0xff]  ;;  %v371_v9 = vld [vmem:[#allocation7 + $0x10] sm:$0xff]  ;;  %v1474_v11 = vpack.c.bf16 %v289_v6, %v288_v4  ;;  %s1826_s27 = smov 112   ;;  %s1827_s28 = smov 120   ;;  %vm784_vm4 = vcmask 130112  }
  0x92   : > { %v372_v10 = vld [vmem:[#allocation7 + $0x18] sm:$0xff]  ;;  %v1477_v12 = vpack.c.bf16 %v370_v8, %v369_v7  ;;  %s1828_s29 = smov 104   ;;  %s1829_s10 = smov 96   ;;  %v1133_v7 = vld [vmem:[#allocation10] sm:$0xff]  ;;  %v1134_v8 = vld [vmem:[#allocation10 + $0x8] sm:$0xff]  ;;  %vm957_vm5 = vcmask 195712  }
  0x93   : > { %1472 = vmatpush3.bf16.msra.mxu0 %v1471_v5  ;;  %v1480_v13 = vpack.c.bf16 %v372_v10, %v371_v9  ;;  %v285_v14 = vld [vmem:[#allocation4] sm:$0xff]  ;;  %s1830_s30 = smov 80   ;;  %s1831_s7 = smov 72   ;;  %v1483_v9 = vpack.c.bf16 %v1134_v8, %v1133_v7  ;;  %v1135_v10 = vld [vmem:[#allocation10 + $0x10] sm:$0xff]  ;;  %vm1130_vm6 = vcmask 261312  }
  0x94   : > { %1473 = vmatprep.subr.bf16.mxu0 %v1823_v0  ;;  %1478 = vmatpush3.bf16.msra.mxu1 %v1477_v12  ;;  %s1832_s17 = smov 88   ;;  %s1833_s24 = smov 8  }
  0x95   : > { %1479 = vmatprep.subr.bf16.mxu1 %v1823_v0  ;;  %s1834_s1 = smov 16   ;;  %s1835_s14 = smov 24  }
  0x96   : > { %s278_s15 = sand.u32 1, %s1799_s19   ;;  %s2238_s13 = sshll.u32 %s1807_s21, 7 }
  0x97   : > { %1475 = vmatpush3.bf16.msra.mxu0 %v1474_v11  ;;  %v1136_v11 = vld [vmem:[#allocation10 + $0x18] sm:$0xff]  ;;  %s1345_s11 = sshll.u32 %s278_s15, 3  ;;  %p2239_p0 = scmp.ne.s32.totalorder %s2225_s8, 0 }
  0x98   : > { %1429 = vmatprep.subr.mxu0 %v1825_v1  ;;  %1481 = vmatpush3.bf16.msra.mxu1 %v1480_v13  ;;  %s280_s6 = scalar_lea.vmem [#allocation12], %s1345_s11 }
  0x99   : > { %1419 = vmatprep.subr.mxu1 %v1825_v1  ;;  %s1233_s25 = sshll.u32 %s280_s6, 4  ;;  %s2143_s25 = int_to_ptr.vmem [resolvable:$true] %s1233_s25 }
  0x9a   : > { %1406 = vmatmul.mubr.msk.f32.vlgmr.msra.gmra.mrb[0].mxu0 %vm290_vm1, %v285_v14 }
  0x9b   : > { %1431 = vmatprep.mubr.msk.f32.mxu0 %vm1824_vm0, %v1825_v1  ;;  %1417 = vmatmul.mubr.msk.f32.vlgmr.msra.gmra.mrb[0].mxu1 %vm290_vm1, %v285_v14  ;;  %v1486_v14 = vpack.c.bf16 %v1136_v11, %v1135_v10 }
  0x9c   : > { %1421 = vmatprep.mubr.msk.f32.mxu1 %vm1824_vm0, %v1825_v1 }
 0x16d   : > { %v360_v15 = vpop.f32.mrb[0].mxu0 }
 0x16e   : > { %365 = vst.msk [vmem:[#allocation2] sm:$0xff] %vm364_vm2, %v360_v15  ;;  %v1407_v16 = vpop.f32.mrb[1].mxu0  ;;  %v443_v17 = vpop.f32.mrb[0].mxu1 }
 0x16f   : > { %v1418_v18 = vpop.f32.mrb[1].mxu1 }
 0x175   : > { %v786_v19 = vld [vmem:[#allocation2] sm:$0xff] }
 0x176   : > { %790 = vrot.lane.b32.xlu1 %v786_v19, %s1826_s27  ;;  %617 = vrot.lane.b32.xlu0 %v786_v19, %s1827_s28 }
 0x177   : > { %1420 = vmatpush3.xpose.msk.msra.mxu1 %vm448_vm3, %v786_v19 }
 0x178   : > { %1424 = vmatprep.subr.mxu1 %v1825_v1 }
 0x17a   : > { %1422 = vmatmul.mubr.msk.f32.vlgmr.msra.gmra.mrb[2].mxu1 %vm448_vm3, %v443_v17  ;;  %787 = vrot.lane.b32.xlu1 %v443_v17, %s1826_s27  ;;  %s2141_s27 = scalar_lea.hbm %s2194_s5, %s2238_s13 }
 0x17b   : > { %614 = vrot.lane.b32.xlu0 %v443_v17, %s1827_s28  ;;  %1426 = vmatprep.mubr.msk.f32.mxu1 %vm1824_vm0, %v1825_v1  ;;  %s1219_s28 = scalar_lea.sflag [#allocation6], %s278_s15 }
 0x17e   : > { %960 = vrot.lane.b32.xlu1 %v443_v17, %s1828_s29 }
 0x17f   : > { %963 = vrot.lane.b32.xlu0 %v786_v19, %s1828_s29  ;;  %s1725_s29 = scalar_lea.vmem %s2143_s25, 128 }
 0x180   : > { %p1726_p11 = scmp.ne.s32.totalorder %s2143_s25, %s1725_s29 }
 0x182   : > { %534 = vrot.lane.b32.xlu1 %v786_v19, %s1829_s10  ;;  %p1727_p5 = pnand %p1726_p11, %p2239_p0  ;;  %s1836_s10 = smov [#allocation12]  }
 0x183   : > { %s1729_s21 = sshll.u32 %s1836_s10, 4  ;;  %s1730_s21 = int_to_ptr.vmem [resolvable:$false] %s1729_s21 }
 0x184   : > { %p1728_p7 = pneg %p1727_p5  ;;  %p1732_p1 = scmp.lt.s32.totalorder %s2143_s25, %s1730_s21 }
 0x1e8   : > { %v791_v20 = vpop.permute.xlu1 %790  ;;  %v618_v21 = vpop.permute.xlu0 %617 }
 0x1e9   : > { %1430 = vmatpush3.xpose.msk.msra.mxu0 %vm448_vm3, %v618_v21 }
 0x1ea   : > { %1439 = vmatprep.subr.mxu0 %v1825_v1 }
 0x1ec   : > { %v788_v22 = vpop.permute.xlu1 %787 }
 0x1ed   : > { %v615_v23 = vpop.permute.xlu0 %614 }
 0x1ee   : > { %1432 = vmatmul.mubr.msk.f32.vlgmr.msra.gmra.mrb[2].mxu0 %vm448_vm3, %v615_v23 }
 0x1ef   : > { %1440 = vmatpush3.xpose.msk.msra.mxu0 %vm448_vm3, %v791_v20  ;;  %1441 = vmatprep.mubr.msk.f32.mxu0 %vm1824_vm0, %v1825_v1 }
 0x1f0   : > { %v961_v24 = vpop.permute.xlu1 %960  ;;  %1449 = vmatprep.subr.mxu0 %v1825_v1 }
 0x1f1   : > { %v964_v25 = vpop.permute.xlu0 %963 }
 0x1f2   : > { %1442 = vmatmul.mubr.msk.f32.vlgmr.msra.gmra.mrb[4].mxu0 %vm448_vm3, %v788_v22 }
 0x1f3   : > { %1450 = vmatpush3.xpose.msk.msra.mxu0 %vm448_vm3, %v964_v25  ;;  %1451 = vmatprep.mubr.msk.f32.mxu0 %vm1824_vm0, %v1825_v1 }
 0x1f4   : > { %v535_v26 = vpop.permute.xlu1 %534  ;;  %1482 = vmatprep.subr.bf16.mxu0 %v1823_v0 }
 0x1f5   : > { %1425 = vmatpush3.msra.mxu1 %v535_v26 }
 0x1f6   : > { %1452 = vmatmul.mubr.msk.f32.vlgmr.msra.gmra.mrb[6].mxu0 %vm448_vm3, %v961_v24  ;;  %1434 = vmatprep.subr.mxu1 %v1825_v1 }
 0x1f7   : > { %1467 = vmatprep.mubr.msk.f32.mxu0 %vm1824_vm0, %v1825_v1  ;;  %1484 = vmatpush3.bf16.msra.mxu0 %v1483_v9 }
 0x1f8   : > { %1485 = vmatprep.subr.bf16.mxu0 %v1823_v0 }
 0x1fb   : > { %1487 = vmatpush3.bf16.msra.mxu0 %v1486_v14 }
 0x24d   : > { %v521_v27 = vpop.f32.mrb[2].mxu1 }
 0x24e   : > { %v1423_v28 = vpop.f32.mrb[3].mxu1  ;;  %v525_v29 = vsel %vm448_vm3, %v521_v27, -inf }
 0x24f   : > { %526 = vmax.xlane.f32.xlu0 %v525_v29  ;;  %v1360_v28 = vld [vmem:[%s2193_s4] ss:$0 sm:$0xff] }
 0x2c1   : > { %v689_v30 = vpop.f32.mrb[2].mxu0 }
 0x2c2   : > { %v1433_v31 = vpop.f32.mrb[3].mxu0  ;;  %v693_v32 = vsel %vm448_vm3, %v689_v30, -inf }
 0x2c3   : > { %694 = vmax.xlane.f32.xlu1 %v693_v32 }
 0x2c5   : > { %v862_v33 = vpop.f32.mrb[4].mxu0 }
 0x2c6   : > { %v1443_v34 = vpop.f32.mrb[5].mxu0  ;;  %v866_v35 = vsel %vm448_vm3, %v862_v33, -inf }
 0x2c7   : > { %867 = vmax.xlane.f32.xlu0 %v866_v35 }
 0x2c9   : > { %v1035_v36 = vpop.f32.mrb[6].mxu0 }
 0x2ca   : > { %v1453_v37 = vpop.f32.mrb[7].mxu0  ;;  %v1039_v38 = vsel %vm448_vm3, %v1035_v36, -inf }
 0x2cb   : > { %1040 = vmax.xlane.f32.xlu0 %v1039_v38 }
 0x2d4   : > { %875 = vrot.lane.b32.xlu1 %v786_v19, %s1830_s30  ;;  %s1731_s30 = scalar_lea.vmem %s1730_s21, 256 }
 0x2d5   : > { %p1733_p4 = scmp.lt.s32.totalorder %s1731_s30, %s1725_s29 }
 0x2d7   : > { %p1734_p9 = por %p1733_p4, %p1732_p1 }
 0x2d8   : > { %1048 = vrot.lane.b32.xlu1 %v786_v19, %s1831_s7 }
 0x2d9   : > { %p1735_p2 = pnand %p1734_p9, %p1728_p7 }
 0x2dc   : > { %v527_v39 = vpop.xlane.xlu0 %526 }
 0x2dd   : > { %v528_v40 = vsub.f32 %v521_v27, %v527_v39 }
 0x2df   : > { %v529_v41 = vmul.f32 1.442695, %v528_v40 }
 0x2e1   : > { %1595 = vpow2.f32 %v529_v41  ;;  %702 = vrot.lane.b32.xlu0 %v786_v19, %s1832_s17 }
 0x2eb   : > { %v1596_v42 = vpop.eup %1595 }
 0x2ec   : > { %1427 = vmatmul.mubr.msk.f32.vlgmr.msra.gmra.mrb[4].mxu1 %vm448_vm3, %v1596_v42  ;;  %v531_v61 = vsel %vm448_vm3, %v1596_v42, 0.0 }
 0x2ed   : > { %1436 = vmatprep.mubr.msk.f32.mxu1 %vm1824_vm0, %v1825_v1 }
 0x350   : > { %v695_v43 = vpop.xlane.xlu1 %694 }
 0x351   : > { %v696_v44 = vsub.f32 %v689_v30, %v695_v43 }
 0x353   : > { %v697_v45 = vmul.f32 1.442695, %v696_v44 }
 0x354   : > { %v868_v46 = vpop.xlane.xlu0 %867  ;;  %v876_v53 = vpop.permute.xlu1 %875 }
 0x355   : > { %1597 = vpow2.f32 %v697_v45  ;;  %v869_v47 = vsub.f32 %v862_v33, %v868_v46 }
 0x357   : > { %v870_v48 = vmul.f32 1.442695, %v869_v47 }
 0x358   : > { %v1041_v49 = vpop.xlane.xlu0 %1040  ;;  %v1049_v57 = vpop.permute.xlu1 %1048 }
 0x359   : > { %1599 = vpow2.f32 %v870_v48  ;;  %v1042_v50 = vsub.f32 %v1035_v36, %v1041_v49 }
 0x35b   : > { %v1043_v51 = vmul.f32 1.442695, %v1042_v50 }
 0x35c   : > { %v703_v52 = vpop.permute.xlu0 %702 }
 0x35d   : > { %1601 = vpow2.f32 %v1043_v51  ;;  %1435 = vmatpush3.msra.mxu1 %v703_v52 }
 0x35e   : > { %1444 = vmatprep.subr.mxu1 %v1825_v1 }
 0x35f   : > { %v1598_v54 = vpop.eup %1597 }
 0x360   : > { %1437 = vmatmul.mubr.msk.f32.vlgmr.msra.gmra.mrb[6].mxu1 %vm448_vm3, %v1598_v54  ;;  %v699_v55 = vsel %vm448_vm3, %v1598_v54, 0.0 }
 0x361   : > { %1445 = vmatpush3.msra.mxu1 %v876_v53  ;;  %700 = vadd.xlane.f32.xlu0 %v699_v55 }
 0x362   : > { %1446 = vmatprep.mubr.msk.f32.mxu1 %vm1824_vm0, %v1825_v1  ;;  %1454 = vmatprep.subr.mxu1 %v1825_v1 }
 0x363   : > { %v1600_v56 = vpop.eup %1599 }
 0x364   : > { %1447 = vmatmul.mubr.msk.f32.vlgmr.msra.gmra.mrb[8].mxu1 %vm448_vm3, %v1600_v56  ;;  %v872_v58 = vsel %vm448_vm3, %v1600_v56, 0.0 }
 0x365   : > { %1455 = vmatpush3.msra.mxu1 %v1049_v57  ;;  %873 = vadd.xlane.f32.xlu1 %v872_v58 }
 0x366   : > { %1456 = vmatprep.mubr.msk.f32.mxu1 %vm1824_vm0, %v1825_v1 }
 0x367   : > { %v1602_v59 = vpop.eup %1601 }
 0x368   : > { %1457 = vmatmul.mubr.msk.f32.vlgmr.msra.gmra.mrb[10].mxu1 %vm448_vm3, %v1602_v59  ;;  %v1045_v60 = vsel %vm448_vm3, %v1602_v59, 0.0 }
 0x369   : > { %1046 = vadd.xlane.f32.xlu0 %v1045_v60 }
 0x36d   : > { %532 = vadd.xlane.f32.xlu0 %v531_v61 }
 0x3bf   : > { %v606_v62 = vpop.f32.mrb[4].mxu1 }
 0x3c0   : > { %v1428_v63 = vpop.f32.mrb[5].mxu1 }
 0x3ee   : > { %v701_v2 = vpop.xlane.xlu0 %700 }
 0x3f2   : > { %v874_v1 = vpop.xlane.xlu1 %873 }
 0x3f6   : > { %v1047_v3 = vpop.xlane.xlu0 %1046 }
 0x3fa   : > { %v533_v4 = vpop.xlane.xlu0 %532 }
 0x3fb   : > { %1603 = vrcp.f32 %v533_v4 }
 0x3fc   : > { %1605 = vrcp.f32 %v701_v2 }
 0x3fd   : > { %1607 = vrcp.f32 %v874_v1 }
 0x3fe   : > { %1609 = vrcp.f32 %v1047_v3 }
 0x405   : > { %v1604_v5 = vpop.eup %1603 }
 0x406   : > { %v611_v6 = vmul.f32 %v1604_v5, %v606_v62  ;;  %v1606_v12 = vpop.eup %1605 }
 0x407   : > { %v1608_v17 = vpop.eup %1607 }
 0x408   : > { %612 = vst.msk [vmem:[#allocation3] sm:$0xff] %vm448_vm3, %v611_v6  ;;  %v1610_v21 = vpop.eup %1609 }
 0x433   : > { %v774_v13 = vpop.f32.mrb[6].mxu1 }
 0x434   : > { %v779_v15 = vmul.f32 %v1606_v12, %v774_v13  ;;  %v1438_v16 = vpop.f32.mrb[7].mxu1 }
 0x436   : > { %781 = vrot.lane.b32.xlu1 %v779_v15, %s1833_s24 }
 0x437   : > { %v947_v18 = vpop.f32.mrb[8].mxu1 }
 0x438   : > { %v952_v19 = vmul.f32 %v1608_v17, %v947_v18  ;;  %v1448_v20 = vpop.f32.mrb[9].mxu1 }
 0x43a   : > { %954 = vrot.lane.b32.xlu0 %v952_v19, %s1834_s1 }
 0x43b   : > { %v1120_v22 = vpop.f32.mrb[10].mxu1 }
 0x43c   : > { %v1125_v23 = vmul.f32 %v1610_v21, %v1120_v22  ;;  %v1458_v24 = vpop.f32.mrb[11].mxu1 }
 0x43e   : > { %1127 = vrot.lane.b32.xlu1 %v1125_v23, %s1835_s14 }
 0x4a8   : > { %v782_v25 = vpop.permute.xlu1 %781 }
 0x4a9   : > { %785 = vst.msk [vmem:[#allocation3] sm:$0xff] %vm784_vm4, %v782_v25 }
 0x4ac   : > { %v955_v0 = vpop.permute.xlu0 %954 }
 0x4ad   : > { %958 = vst.msk [vmem:[#allocation3] sm:$0xff] %vm957_vm5, %v955_v0 }
 0x4b0   : > { %v1128_v26 = vpop.permute.xlu1 %1127 }
 0x4b1   : > { %1131 = vst.msk [vmem:[#allocation3] sm:$0xff] %vm1130_vm6, %v1128_v26 }
 0x4b8   : > { %v1132_v27 = vld [vmem:[#allocation3] sm:$0xff] }
 0x4b9   : > { %1468 = vmatmul.mubr.msk.f32.vlgmr.msra.gmra.mrb[8].mxu0 %vm290_vm1, %v1132_v27 }
 0x58c   : > { %v1213_v29 = vpop.f32.mrb[8].mxu0 }
 0x58d   : > { %v1214_v30 = vadd.f32 %v1360_v28, %v1213_v29  ;;  %v1469_v31 = vpop.f32.mrb[9].mxu0 }
 0x58f   : > { %1217 = vst.msk [vmem:[%s280_s6] sm:$0xff] %vm290_vm1, %v1214_v30 }
 0x590   : > { %1738 = shalt.err (!%p1735_p2)
}
 0x591   : > { %s1739_s7 = scalar_lea.hbm %s2141_s27, 128  ;;  %s1743_s1 = scalar_lea.hbm %s2194_s5, 256 }
 0x592   : > { %p1740_p3 = scmp.ne.s32.totalorder %s2141_s27, %s1739_s7  ;;  %p1744_p8 = scmp.lt.u32.totalorder %s2141_s27, %s2194_s5 }
 0x593   : > { %p1745_p12 = scmp.lt.u32.totalorder %s1743_s1, %s1739_s7  ;;  %p1747_p11 = scmp.lt.u32.totalorder %s1739_s7, %s2141_s27 }
 0x594   : > { %p1741_p6 = pnand %p1740_p3, %p2239_p0 }
 0x595   : > { %p1746_p13 = por %p1745_p12, %p1744_p8 }
 0x596   : > { %p1742_p10 = pneg %p1741_p6 }
 0x597   : > { %p1748_p5 = por %p1747_p11, %p1746_p13 }
 0x599   : > { %p1749_p7 = pnand %p1748_p5, %p1742_p10 }
 0x59b   : > { %1752 = shalt.err (!%p1749_p7)
}
 0x59c   : > { %1502 = dma.vmem_to_hbm [thread:$0]  (%p2239_p0), %s2143_s25, 128, %s2141_s27, %s1219_s28  }
 0x59d PF: > { %p1527_p1 = scmp.ge.s32.totalorder %s1815_s23, 2  ;;  %s1245_s11 = sand.u32 1, %s1795_s18  }
 0x59e   : > { %p2240_p4 = scmp.ne.s32.totalorder %s2226_s9, 0  ;;  %s1246_s16 = scalar_lea.sflag [#allocation6], %s1245_s11 }
 0x5a0   : > { %p1518_p9 = pnand %p1527_p1, %p2240_p4 }
 0x5a2   : > { %1790 = dma.done.wait (!%p1518_p9), %s1246_s16, 128  }
 0x5a3   : > { %1792 = vsyncadd (!%p1518_p9), %s1246_s16, 4294967168  ;;  %s21_s23 = sadd.s32 1, %s1815_s23   ;;  %s2241_s21 = sld [smem:[#allocation17_spill]] }
 0x5a4   : > { %p18_p2 = scmp.ge.s32.totalorder %s21_s23, 4   ;;  %s2242_s22 = sld [smem:[#allocation18_spill]] }
 0x5a5   : > { %s2243_s18 = smov %s1799_s19  ;;  %s2244_s19 = smov %s1803_s20 }
 0x5a6   : > { %s2245_s20 = smov %s1977_s12  ;;  %20 = sbr.rel (!%p18_p2) target bundleno = 10 (0xa), region = 95 }
 0x5ad   :  { %1251 = vsyncpa [#allocation5], 1 }
 0x5ae   :  { %1253 = vsyncpa [#allocation5 + $0x1], 1 }
 0x5af   :  { %1254 = vsyncpa [#allocation8], 1 }
 0x5b0   :  { %1255 = vsyncpa [#allocation11], 1 }
 0x5b1   :  { %1256 = vsyncpa [#allocation6], 1 }
 0x5b2   :  { %1258 = vsyncpa [#allocation6 + $0x1], 1 }

// kernel: tpu_custom_call.1
= control target key start
LH: loop header
LB: loop body
LE: loop exit
PB: predicated region body
PF: predicated region fallthrough
CT: control target
= control target key end

     0   :  { %10 = vsyncpa [#allocation5], 0  ;;  %s2252_s0 = inlined_call_operand.hbm [shape: f32[2,8,32], index: 0, kind: input, shape index: {}]   ;;  %s2253_s1 = inlined_call_operand.hbm [shape: f32[32,32], index: 1, kind: input, shape index: {}]   ;;  %s2254_s2 = inlined_call_operand.hbm [shape: f32[32,64], index: 2, kind: input, shape index: {}]   ;;  %s2255_s3 = inlined_call_operand.hbm [shape: f32[32,32], index: 3, kind: input, shape index: {}]   ;;  %s2256_s4 = inlined_call_operand.vmem [shape: f32[1,32], index: 4, kind: input, shape index: {}]   ;;  %s2257_s5 = inlined_call_operand.hbm [shape: f32[2,8,32], index: 5, kind: output, shape index: {}]  }
   0x1   :  { %12 = vsyncpa [#allocation5 + $0x1], 0 }
   0x2   :  { %13 = vsyncpa [#allocation8], 0 }
   0x3   :  { %14 = vsyncpa [#allocation11], 0 }
   0x4   :  { %15 = vsyncpa [#allocation6], 0 }
   0x5   :  { %17 = vsyncpa [#allocation6 + $0x1], 0  ;;  %s1897_s18 = smov 0   ;;  %s1899_s19 = smov 0  }
   0x6   :  { %s1901_s20 = smov 0   ;;  %s1903_s21 = smov 0  }
   0x7   :  { %s1905_s22 = smov 0   ;;  %s1907_s23 = smov 0  }
   0x8 LB: > { %2264 = sst [smem:[#allocation17_spill]] %s1825_s18  ;;  %s1360_s24 = sadd.s32 4294967295, %s1845_s23   ;;  %s1845_s23 = sphi %s1907_s23, %s23_s23   ;;  %s1841_s22 = sphi %s1905_s22, %s2287_s22   ;;  %s1837_s21 = sphi %s1903_s21, %s2286_s21   ;;  %s1833_s20 = sphi %s1901_s20, %s2285_s20   ;;  %s1829_s19 = sphi %s1899_s19, %s2284_s19   ;;  %s1825_s18 = sphi %s1897_s18, %s2283_s18  }
   0x9   : > { %s1361_s25 = sadd.s32 4294967294, %s1845_s23   ;;  %p55_p0 = scmp.ne.s32.totalorder %s1829_s19, %s1825_s18 }
   0xa   : > { %p1931_p1 = scmp.eq.s32.totalorder %s1360_s24, 0  ;;  %p1935_p2 = scmp.eq.s32.totalorder %s1360_s24, 1 }
   0xb   : > { %p171_p3 = scmp.eq.s32.totalorder %s1361_s25, 1  ;;  %p1362_p5 = scmp.ge.s32.totalorder %s1845_s23, 1 }
   0xc   : > { %s2265_s26 = scalar_select %p1931_p1, 1, 0 }
   0xd   : > { %s2266_s27 = scalar_select %p1935_p2, 1, 0 }
   0xe   : > { %p1941_p4 = por %p1931_p1, %p55_p0  ;;  %p1946_p6 = por %p171_p3, %p55_p0 }
   0xf   : > { %p178_p7 = scmp.lt.s32.totalorder %s1845_s23, 3  ;;  %s1847_s6 = smov [#allocation7]  }
  0x10   : > { %s2267_s28 = scalar_select %p1941_p4, 1, 0 }
  0x11   : > { %s2268_s29 = scalar_select %p1946_p6, 1, 0 }
  0x12   : > { %p1951_p8 = pnand %p1362_p5, %p178_p7  ;;  %s190_s7 = sshll.u32 %s1847_s6, 4  ;;  %s1955_s7 = int_to_ptr.vmem [resolvable:$true] %s190_s7 }
  0x13   : > { %2269 = sst [smem:[#allocation18_spill]] %s2268_s29  ;;  %s1848_s9 = smov [#allocation9]  }
  0x14   : > { %s2270_s30 = scalar_select %p1951_p8, 1, 0 }
  0x15   : > { %p1533_p9 = pneg %p1951_p8  ;;  %s203_s10 = sshll.u32 %s1848_s9, 4  ;;  %s1966_s10 = int_to_ptr.vmem [resolvable:$true] %s203_s10 }
  0x16   : > { %s1849_s11 = smov [#allocation10]   ;;  %s1641_s15 = scalar_lea.hbm %s2253_s1, 512 }
  0x17   : > { %p1962_p11 = pnand %p1533_p9, %p1931_p1  ;;  %s1968_s12 = sshll.u32 %s1849_s11, 4  ;;  %s217_s12 = int_to_ptr.vmem [resolvable:$true] %s1968_s12 }
  0x18   : > { %p1642_p12 = scmp.ne.s32.totalorder %s2253_s1, %s1641_s15  ;;  %p1648_p5 = scmp.lt.u32.totalorder %s1641_s15, %s2253_s1 }
  0x19   : > { %p1978_p13 = pneg %p1962_p11 }
  0x1b   : > { %p1644_p0 = pnand %p1978_p13, %p1642_p12 }
  0x1d   : > { %p1645_p3 = pneg %p1644_p0 }
  0x1f   : > { %p1650_p7 = pnand %p1648_p5, %p1645_p3 }
  0x21   : > { %1653 = shalt.err (!%p1650_p7)
}
  0x22   : > { %s1654_s9 = scalar_lea.vmem %s1955_s7, 512  ;;  %p1662_p1 = scmp.lt.s32.totalorder %s1955_s7, %s1955_s7 }
  0x23   : > { %p1655_p9 = scmp.ne.s32.totalorder %s1955_s7, %s1654_s9  ;;  %p1663_p4 = scmp.lt.s32.totalorder %s1654_s9, %s1654_s9 }
  0x25   : > { %p1657_p10 = pnand %p1655_p9, %p1978_p13  ;;  %p1664_p12 = por %p1663_p4, %p1662_p1 }
  0x27   : > { %p1658_p6 = pneg %p1657_p10 }
  0x29   : > { %p1665_p0 = pnand %p1664_p12, %p1658_p6 }
  0x2b   : > { %1668 = shalt.err (!%p1665_p0)
}
  0x2c   : > { %s1850_s11 = smov 128   ;;  %s1851_s13 = smov 8  }
  0x2d   : > { %1536 = dma.hbm_to_vmem [thread:$0]  (!%p1962_p11), %s2253_s1, 512, %s1955_s7, [#allocation8], %s1850_s11, %s1850_s11, %s1851_s13  }
  0x2e   : > { %s1669_s25 = scalar_lea.hbm %s2254_s2, 512 }
  0x2f   : > { %p1670_p1 = scmp.ne.s32.totalorder %s2254_s2, %s1669_s25  ;;  %p1676_p10 = scmp.lt.u32.totalorder %s1669_s25, %s2254_s2 }
  0x31   : > { %p1672_p4 = pnand %p1670_p1, %p1978_p13 }
  0x33   : > { %p1673_p6 = pneg %p1672_p4 }
  0x35   : > { %p1678_p3 = pnand %p1676_p10, %p1673_p6 }
  0x37   : > { %1681 = shalt.err (!%p1678_p3)
}
  0x38   : > { %s1682_s7 = scalar_lea.vmem %s1966_s10, 512  ;;  %p1690_p12 = scmp.lt.s32.totalorder %s1966_s10, %s1966_s10 }
  0x39   : > { %p1683_p5 = scmp.ne.s32.totalorder %s1966_s10, %s1682_s7  ;;  %p1691_p0 = scmp.lt.s32.totalorder %s1682_s7, %s1682_s7 }
  0x3b   : > { %p1685_p7 = pnand %p1683_p5, %p1978_p13  ;;  %p1692_p1 = por %p1691_p0, %p1690_p12 }
  0x3d   : > { %p1686_p9 = pneg %p1685_p7 }
  0x3f   : > { %p1693_p4 = pnand %p1692_p1, %p1686_p9 }
  0x41   : > { %1696 = shalt.err (!%p1693_p4)
}
  0x42   : > { %1539 = dma.hbm_to_vmem [thread:$0]  (!%p1962_p11), %s2254_s2, 512, %s1966_s10, [#allocation8], %s1850_s11, %s1850_s11, %s1851_s13  }
  0x43   : > { %s1697_s16 = scalar_lea.hbm %s2255_s3, 512 }
  0x44   : > { %p1698_p6 = scmp.ne.s32.totalorder %s2255_s3, %s1697_s16  ;;  %p1704_p5 = scmp.lt.u32.totalorder %s1697_s16, %s2255_s3 }
  0x46   : > { %p1700_p10 = pnand %p1698_p6, %p1978_p13 }
  0x48   : > { %p1701_p3 = pneg %p1700_p10 }
  0x4a   : > { %p1706_p7 = pnand %p1704_p5, %p1701_p3 }
  0x4c   : > { %1709 = shalt.err (!%p1706_p7)
}
  0x4d   : > { %s1710_s7 = scalar_lea.vmem %s217_s12, 512  ;;  %p1718_p1 = scmp.lt.s32.totalorder %s217_s12, %s217_s12 }
  0x4e   : > { %p1711_p9 = scmp.ne.s32.totalorder %s217_s12, %s1710_s7  ;;  %p1719_p4 = scmp.lt.s32.totalorder %s1710_s7, %s1710_s7 }
  0x50   : > { %p1713_p12 = pnand %p1711_p9, %p1978_p13  ;;  %p1720_p8 = por %p1719_p4, %p1718_p1 }
  0x52   : > { %p1714_p0 = pneg %p1713_p12 }
  0x54   : > { %p1721_p2 = pnand %p1720_p8, %p1714_p0 }
  0x56   : > { %1724 = shalt.err (!%p1721_p2)
}
  0x57   : > { %1542 = dma.hbm_to_vmem [thread:$0]  (!%p1962_p11), %s2255_s3, 512, %s217_s12, [#allocation11], %s1850_s11, %s1850_s11, %s1851_s13  }
  0x58   : > { %s42_s24 = sadd.s32 1, %s1833_s20  ;;  %s35_s8 = sadd.s32 1, %s1841_s22 }
  0x59   : > { %p49_p2 = scmp.ne.s32.totalorder %s1833_s20, %s1829_s19  ;;  %p37_p8 = scmp.ge.s32.totalorder %s35_s8, 2 }
  0x5a   : > { %p50_p13 = scmp.eq.s32.totalorder %s1845_s23, 0  ;;  %p2273_p6 = scmp.ne.s32.totalorder %s2266_s27, 0 }
  0x5b   : > { %p1554_p3 = scmp.lt.s32.totalorder %s1845_s23, 2  ;;  %s2289_s8 = smov (%p37_p8, %s35_s8), 0 }
  0x5c   : > { %p2057_p10 = por %p2273_p6, %p49_p2  ;;  %p51_p5 = por %p50_p13, %p49_p2 }
  0x5d   : > { %s233_s14 = sand.u32 1, %s1833_s20   ;;  %s39_s15 = ssub.s32 %s1841_s22, %s2289_s8 }
  0x5e   : > { %p40_p7 = scmp.eq.s32.totalorder %s39_s15, 0  ;;  %s1367_s12 = sshll.u32 %s233_s14, 3 }
  0x5f   : > { %s1368_s11 = sshll.u32 %s1841_s22, 7  ;;  %s237_s25 = scalar_lea.vmem [#allocation4], %s1367_s12 }
  0x60   : > { %s2069_s13 = scalar_select %p40_p7, %s1833_s20, %s42_s24  }
  0x61   : > { %s2074_s27 = scalar_lea.hbm %s2252_s0, %s1368_s11  ;;  %s244_s6 = sshll.u32 %s237_s25, 4  ;;  %s2076_s6 = int_to_ptr.vmem [resolvable:$true] %s244_s6 }
  0x62   : > { %p2080_p11 = pnand %p1554_p3, %p51_p5  ;;  %s234_s7 = scalar_lea.sflag [#allocation5], %s233_s14 }
  0x63   : > { %s1725_s10 = scalar_lea.hbm %s2074_s27, 128  ;;  %s1730_s15 = scalar_lea.hbm %s2252_s0, 256 }
  0x64   : > { %p1726_p9 = scmp.ne.s32.totalorder %s2074_s27, %s1725_s10  ;;  %p1727_p12 = pneg %p2080_p11 }
  0x65   : > { %p1731_p4 = scmp.lt.u32.totalorder %s2074_s27, %s2252_s0  ;;  %p1732_p2 = scmp.lt.u32.totalorder %s1730_s15, %s1725_s10 }
  0x66   : > { %p1728_p0 = pnand %p1727_p12, %p1726_p9  ;;  %p1734_p13 = scmp.lt.u32.totalorder %s1725_s10, %s2074_s27 }
  0x67   : > { %p1733_p8 = por %p1732_p2, %p1731_p4 }
  0x68   : > { %p1729_p1 = pneg %p1728_p0 }
  0x69   : > { %p1735_p6 = por %p1734_p13, %p1733_p8 }
  0x6b   : > { %p1736_p3 = pnand %p1735_p6, %p1729_p1 }
  0x6d   : > { %1739 = shalt.err (!%p1736_p3)
}
  0x6e   : > { %s1740_s14 = scalar_lea.vmem %s2076_s6, 128  ;;  %s1852_s16 = smov [#allocation4]  }
  0x6f   : > { %p1741_p5 = scmp.ne.s32.totalorder %s2076_s6, %s1740_s14  ;;  %s1745_s17 = sshll.u32 %s1852_s16, 4  ;;  %s1746_s17 = int_to_ptr.vmem [resolvable:$false] %s1745_s17 }
  0x70   : > { %s1747_s25 = scalar_lea.vmem %s1746_s17, 256  ;;  %p1748_p0 = scmp.lt.s32.totalorder %s2076_s6, %s1746_s17 }
  0x71   : > { %p1743_p7 = pnand %p1741_p5, %p1727_p12  ;;  %p1749_p4 = scmp.lt.s32.totalorder %s1747_s25, %s1740_s14 }
  0x73   : > { %p1744_p9 = pneg %p1743_p7  ;;  %p1750_p2 = por %p1749_p4, %p1748_p0 }
  0x75   : > { %p1751_p8 = pnand %p1750_p2, %p1744_p9 }
  0x77   : > { %1754 = shalt.err (!%p1751_p8)
}
  0x78   : > { %1546 = dma.hbm_to_vmem [thread:$0]  (!%p2080_p11), %s2074_s27, 128, %s2076_s6, %s234_s7  }
  0x79   : > { %p2276_p1 = scmp.ne.s32.totalorder %s2270_s30, 0 }
  0x7a   : > { %s2112_s10 = sand.u32 (!%p2276_p1), 1, %s1829_s19   ;;  %p2277_p12 = scmp.ne.s32.totalorder (!%p2276_p1), %s2267_s28, 0 }
  0x7b   : > { %253 = sbr.rel (%p2276_p1) target bundleno = 1430 (0x596), region = 40  ;;  %s1370_s18 = sshll.u32 (!%p2276_p1), %s2112_s10, 3 }
  0x7c   : > { %s256_s24 = scalar_lea.sflag (!%p2276_p1), [#allocation5], %s2112_s10  ;;  %s2118_s15 = scalar_lea.vmem (!%p2276_p1), [#allocation4], %s1370_s18 }
  0x82   : > { %1808 = dma.done.wait (%p2277_p12), %s256_s24, 128  }
  0x83   : > { %1810 = vsyncadd (%p2277_p12), %s256_s24, 4294967168  ;;  %p2278_p11 = scmp.ne.s32.totalorder %s2265_s26, 0 }
  0x85   : > { %1812 = dma.done.wait (%p2278_p11), [#allocation8], 1024  }
  0x86   : > { %1814 = vsyncadd (%p2278_p11), [#allocation8], 4294966272 }
  0x87   : > { %1816 = dma.done.wait (%p2278_p11), [#allocation11], 512  }
  0x88   : > { %1818 = vsyncadd (%p2278_p11), [#allocation11], 4294966784  ;;  %v1853_v0 = vmov 0.0|0.0   ;;  %vm1854_vm0 = vmmov 0   ;;  %v1855_v1 = vmov 0.0   ;;  %v303_v2 = vld [vmem:[#allocation9] sm:$0xff] }
  0x89   : > { %1499 = vmatprep.subr.bf16.mxu0 %v1853_v0  ;;  %1434 = vmatprep.mubr.msk.f32.mxu0 %vm1854_vm0, %v1855_v1  ;;  %v304_v3 = vld [vmem:[#allocation9 + $0x8] sm:$0xff]  ;;  %v305_v4 = vld [vmem:[#allocation9 + $0x10] sm:$0xff]  ;;  %v306_v6 = vld [vmem:[#allocation9 + $0x18] sm:$0xff]  ;;  %vm307_vm1 = vcmask 261120   ;;  %vm381_vm2 = vcmask 523264   ;;  %vm465_vm3 = vcmask 64512  }
  0x8a   : > { %1505 = vmatprep.subr.bf16.mxu1 %v1853_v0  ;;  %1445 = vmatprep.mubr.msk.f32.mxu1 %vm1854_vm0, %v1855_v1  ;;  %v1500_v5 = vpack.c.bf16 %v304_v3, %v303_v2  ;;  %v386_v7 = vld [vmem:[#allocation7] sm:$0xff]  ;;  %v387_v8 = vld [vmem:[#allocation7 + $0x8] sm:$0xff]  ;;  %v388_v9 = vld [vmem:[#allocation7 + $0x10] sm:$0xff]  ;;  %v1503_v11 = vpack.c.bf16 %v306_v6, %v305_v4  ;;  %s1856_s26 = smov 112   ;;  %s1857_s28 = smov 120   ;;  %vm801_vm4 = vcmask 130112  }
  0x8b   : > { %v389_v10 = vld [vmem:[#allocation7 + $0x18] sm:$0xff]  ;;  %v1506_v12 = vpack.c.bf16 %v387_v8, %v386_v7  ;;  %s1858_s30 = smov 104   ;;  %s1859_s27 = smov 96   ;;  %v1150_v7 = vld [vmem:[#allocation10] sm:$0xff]  ;;  %v1151_v8 = vld [vmem:[#allocation10 + $0x8] sm:$0xff]  ;;  %vm974_vm5 = vcmask 195712  }
  0x8c   : > { %1501 = vmatpush3.bf16.msra.mxu0 %v1500_v5  ;;  %v1509_v13 = vpack.c.bf16 %v389_v10, %v388_v9  ;;  %v302_v14 = vld [vmem:[%s2118_s15] sm:$0xff]  ;;  %s1860_s6 = smov 80   ;;  %s1861_s9 = smov 72   ;;  %v1512_v9 = vpack.c.bf16 %v1151_v8, %v1150_v7  ;;  %vm1147_vm6 = vcmask 261312  }
  0x8d   : > { %1502 = vmatprep.subr.bf16.mxu0 %v1853_v0  ;;  %1507 = vmatpush3.bf16.msra.mxu1 %v1506_v12  ;;  %s1862_s7 = smov 88   ;;  %v1152_v10 = vld [vmem:[#allocation10 + $0x10] sm:$0xff]  ;;  %s1863_s12 = smov 8  }
  0x8e   : > { %1508 = vmatprep.subr.bf16.mxu1 %v1853_v0  ;;  %s1864_s11 = smov 16   ;;  %s1865_s14 = smov 24  }
  0x8f   : > { %s1392_s25 = sshll.u32 %s1837_s21, 7  ;;  %s297_s24 = scalar_lea.vmem [#allocation12], %s1370_s18 }
  0x90   : > { %1504 = vmatpush3.bf16.msra.mxu0 %v1503_v11  ;;  %v1153_v11 = vld [vmem:[#allocation10 + $0x18] sm:$0xff]  ;;  %s1250_s15 = sshll.u32 %s297_s24, 4  ;;  %s1866_s18 = smov [#allocation12]   ;;  %s2204_s15 = int_to_ptr.vmem [resolvable:$true] %s1250_s15 }
  0x91   : > { %1458 = vmatprep.subr.mxu0 %v1855_v1  ;;  %1510 = vmatpush3.bf16.msra.mxu1 %v1509_v13  ;;  %s1755_s21 = scalar_lea.vmem %s2204_s15, 128 }
  0x92   : > { %1448 = vmatprep.subr.mxu1 %v1855_v1  ;;  %p1756_p13 = scmp.ne.s32.totalorder %s2204_s15, %s1755_s21 }
  0x93   : > { %1435 = vmatmul.mubr.msk.f32.vlgmr.msra.gmra.mrb[0].mxu0 %vm307_vm1, %v302_v14 }
  0x94   : > { %1460 = vmatprep.mubr.msk.f32.mxu0 %vm1854_vm0, %v1855_v1  ;;  %1446 = vmatmul.mubr.msk.f32.vlgmr.msra.gmra.mrb[0].mxu1 %vm307_vm1, %v302_v14  ;;  %v1515_v14 = vpack.c.bf16 %v1153_v11, %v1152_v10  ;;  %p1757_p6 = pnand %p1756_p13, %p2057_p10 }
  0x95   : > { %1450 = vmatprep.mubr.msk.f32.mxu1 %vm1854_vm0, %v1855_v1 }
  0x96   : > { %p1758_p3 = pneg %p1757_p6 }
 0x166   : > { %v377_v15 = vpop.f32.mrb[0].mxu0 }
 0x167   : > { %382 = vst.msk [vmem:[#allocation2] sm:$0xff] %vm381_vm2, %v377_v15  ;;  %v1436_v16 = vpop.f32.mrb[1].mxu0  ;;  %v460_v17 = vpop.f32.mrb[0].mxu1 }
 0x168   : > { %v1447_v18 = vpop.f32.mrb[1].mxu1 }
 0x16e   : > { %v803_v19 = vld [vmem:[#allocation2] sm:$0xff] }
 0x16f   : > { %807 = vrot.lane.b32.xlu1 %v803_v19, %s1856_s26  ;;  %634 = vrot.lane.b32.xlu0 %v803_v19, %s1857_s28 }
 0x170   : > { %1449 = vmatpush3.xpose.msk.msra.mxu1 %vm465_vm3, %v803_v19 }
 0x171   : > { %1453 = vmatprep.subr.mxu1 %v1855_v1 }
 0x173   : > { %1451 = vmatmul.mubr.msk.f32.vlgmr.msra.gmra.mrb[2].mxu1 %vm465_vm3, %v460_v17  ;;  %804 = vrot.lane.b32.xlu1 %v460_v17, %s1856_s26 }
 0x174   : > { %631 = vrot.lane.b32.xlu0 %v460_v17, %s1857_s28  ;;  %1455 = vmatprep.mubr.msk.f32.mxu1 %vm1854_vm0, %v1855_v1 }
 0x177   : > { %977 = vrot.lane.b32.xlu1 %v460_v17, %s1858_s30 }
 0x178   : > { %980 = vrot.lane.b32.xlu0 %v803_v19, %s1858_s30  ;;  %s2202_s30 = scalar_lea.hbm %s2257_s5, %s1392_s25 }
 0x17b   : > { %551 = vrot.lane.b32.xlu1 %v803_v19, %s1859_s27  ;;  %s1236_s27 = scalar_lea.sflag [#allocation6], %s2112_s10 }
 0x1e1   : > { %v808_v20 = vpop.permute.xlu1 %807  ;;  %v635_v21 = vpop.permute.xlu0 %634 }
 0x1e2   : > { %1459 = vmatpush3.xpose.msk.msra.mxu0 %vm465_vm3, %v635_v21 }
 0x1e3   : > { %1468 = vmatprep.subr.mxu0 %v1855_v1 }
 0x1e5   : > { %v805_v22 = vpop.permute.xlu1 %804 }
 0x1e6   : > { %v632_v23 = vpop.permute.xlu0 %631 }
 0x1e7   : > { %1461 = vmatmul.mubr.msk.f32.vlgmr.msra.gmra.mrb[2].mxu0 %vm465_vm3, %v632_v23 }
 0x1e8   : > { %1469 = vmatpush3.xpose.msk.msra.mxu0 %vm465_vm3, %v808_v20  ;;  %1470 = vmatprep.mubr.msk.f32.mxu0 %vm1854_vm0, %v1855_v1 }
 0x1e9   : > { %v978_v24 = vpop.permute.xlu1 %977  ;;  %1478 = vmatprep.subr.mxu0 %v1855_v1 }
 0x1ea   : > { %v981_v25 = vpop.permute.xlu0 %980 }
 0x1eb   : > { %1471 = vmatmul.mubr.msk.f32.vlgmr.msra.gmra.mrb[4].mxu0 %vm465_vm3, %v805_v22 }
 0x1ec   : > { %1479 = vmatpush3.xpose.msk.msra.mxu0 %vm465_vm3, %v981_v25  ;;  %1480 = vmatprep.mubr.msk.f32.mxu0 %vm1854_vm0, %v1855_v1 }
 0x1ed   : > { %v552_v26 = vpop.permute.xlu1 %551  ;;  %1511 = vmatprep.subr.bf16.mxu0 %v1853_v0 }
 0x1ee   : > { %1454 = vmatpush3.msra.mxu1 %v552_v26 }
 0x1ef   : > { %1481 = vmatmul.mubr.msk.f32.vlgmr.msra.gmra.mrb[6].mxu0 %vm465_vm3, %v978_v24  ;;  %1463 = vmatprep.subr.mxu1 %v1855_v1 }
 0x1f0   : > { %1496 = vmatprep.mubr.msk.f32.mxu0 %vm1854_vm0, %v1855_v1  ;;  %1513 = vmatpush3.bf16.msra.mxu0 %v1512_v9 }
 0x1f1   : > { %1514 = vmatprep.subr.bf16.mxu0 %v1853_v0 }
 0x1f4   : > { %1516 = vmatpush3.bf16.msra.mxu0 %v1515_v14 }
 0x246   : > { %v538_v27 = vpop.f32.mrb[2].mxu1 }
 0x247   : > { %v1452_v28 = vpop.f32.mrb[3].mxu1  ;;  %v542_v29 = vsel %vm465_vm3, %v538_v27, -inf }
 0x248   : > { %543 = vmax.xlane.f32.xlu0 %v542_v29  ;;  %v1389_v28 = vld [vmem:[%s2256_s4] ss:$0 sm:$0xff] }
 0x2ba   : > { %v706_v30 = vpop.f32.mrb[2].mxu0 }
 0x2bb   : > { %v1462_v31 = vpop.f32.mrb[3].mxu0  ;;  %v710_v32 = vsel %vm465_vm3, %v706_v30, -inf }
 0x2bc   : > { %711 = vmax.xlane.f32.xlu1 %v710_v32 }
 0x2be   : > { %v879_v33 = vpop.f32.mrb[4].mxu0 }
 0x2bf   : > { %v1472_v34 = vpop.f32.mrb[5].mxu0  ;;  %v883_v35 = vsel %vm465_vm3, %v879_v33, -inf }
 0x2c0   : > { %884 = vmax.xlane.f32.xlu0 %v883_v35 }
 0x2c2   : > { %v1052_v36 = vpop.f32.mrb[6].mxu0 }
 0x2c3   : > { %v1482_v37 = vpop.f32.mrb[7].mxu0  ;;  %v1056_v38 = vsel %vm465_vm3, %v1052_v36, -inf }
 0x2c4   : > { %1057 = vmax.xlane.f32.xlu0 %v1056_v38 }
 0x2cd   : > { %892 = vrot.lane.b32.xlu1 %v803_v19, %s1860_s6  ;;  %s1759_s6 = sshll.u32 %s1866_s18, 4  ;;  %s1760_s6 = int_to_ptr.vmem [resolvable:$false] %s1759_s6 }
 0x2ce   : > { %p1762_p5 = scmp.lt.s32.totalorder %s2204_s15, %s1760_s6 }
 0x2d1   : > { %1065 = vrot.lane.b32.xlu1 %v803_v19, %s1861_s9  ;;  %s1761_s9 = scalar_lea.vmem %s1760_s6, 256 }
 0x2d2   : > { %p1763_p7 = scmp.lt.s32.totalorder %s1761_s9, %s1755_s21 }
 0x2d4   : > { %p1764_p9 = por %p1763_p7, %p1762_p5 }
 0x2d5   : > { %v544_v39 = vpop.xlane.xlu0 %543 }
 0x2d6   : > { %v545_v40 = vsub.f32 %v538_v27, %v544_v39  ;;  %p1765_p0 = pnand %p1764_p9, %p1758_p3 }
 0x2d8   : > { %v546_v41 = vmul.f32 1.442695, %v545_v40 }
 0x2da   : > { %1625 = vpow2.f32 %v546_v41  ;;  %719 = vrot.lane.b32.xlu0 %v803_v19, %s1862_s7 }
 0x2e4   : > { %v1626_v42 = vpop.eup %1625 }
 0x2e5   : > { %1456 = vmatmul.mubr.msk.f32.vlgmr.msra.gmra.mrb[4].mxu1 %vm465_vm3, %v1626_v42  ;;  %v548_v61 = vsel %vm465_vm3, %v1626_v42, 0.0 }
 0x2e6   : > { %1465 = vmatprep.mubr.msk.f32.mxu1 %vm1854_vm0, %v1855_v1 }
 0x349   : > { %v712_v43 = vpop.xlane.xlu1 %711 }
 0x34a   : > { %v713_v44 = vsub.f32 %v706_v30, %v712_v43 }
 0x34c   : > { %v714_v45 = vmul.f32 1.442695, %v713_v44 }
 0x34d   : > { %v885_v46 = vpop.xlane.xlu0 %884  ;;  %v893_v53 = vpop.permute.xlu1 %892 }
 0x34e   : > { %1627 = vpow2.f32 %v714_v45  ;;  %v886_v47 = vsub.f32 %v879_v33, %v885_v46 }
 0x350   : > { %v887_v48 = vmul.f32 1.442695, %v886_v47 }
 0x351   : > { %v1058_v49 = vpop.xlane.xlu0 %1057  ;;  %v1066_v57 = vpop.permute.xlu1 %1065 }
 0x352   : > { %1629 = vpow2.f32 %v887_v48  ;;  %v1059_v50 = vsub.f32 %v1052_v36, %v1058_v49 }
 0x354   : > { %v1060_v51 = vmul.f32 1.442695, %v1059_v50 }
 0x355   : > { %v720_v52 = vpop.permute.xlu0 %719 }
 0x356   : > { %1631 = vpow2.f32 %v1060_v51  ;;  %1464 = vmatpush3.msra.mxu1 %v720_v52 }
 0x357   : > { %1473 = vmatprep.subr.mxu1 %v1855_v1 }
 0x358   : > { %v1628_v54 = vpop.eup %1627 }
 0x359   : > { %1466 = vmatmul.mubr.msk.f32.vlgmr.msra.gmra.mrb[6].mxu1 %vm465_vm3, %v1628_v54  ;;  %v716_v55 = vsel %vm465_vm3, %v1628_v54, 0.0 }
 0x35a   : > { %1474 = vmatpush3.msra.mxu1 %v893_v53  ;;  %717 = vadd.xlane.f32.xlu0 %v716_v55 }
 0x35b   : > { %1475 = vmatprep.mubr.msk.f32.mxu1 %vm1854_vm0, %v1855_v1  ;;  %1483 = vmatprep.subr.mxu1 %v1855_v1 }
 0x35c   : > { %v1630_v56 = vpop.eup %1629 }
 0x35d   : > { %1476 = vmatmul.mubr.msk.f32.vlgmr.msra.gmra.mrb[8].mxu1 %vm465_vm3, %v1630_v56  ;;  %v889_v58 = vsel %vm465_vm3, %v1630_v56, 0.0 }
 0x35e   : > { %1484 = vmatpush3.msra.mxu1 %v1066_v57  ;;  %890 = vadd.xlane.f32.xlu1 %v889_v58 }
 0x35f   : > { %1485 = vmatprep.mubr.msk.f32.mxu1 %vm1854_vm0, %v1855_v1 }
 0x360   : > { %v1632_v59 = vpop.eup %1631 }
 0x361   : > { %1486 = vmatmul.mubr.msk.f32.vlgmr.msra.gmra.mrb[10].mxu1 %vm465_vm3, %v1632_v59  ;;  %v1062_v60 = vsel %vm465_vm3, %v1632_v59, 0.0 }
 0x362   : > { %1063 = vadd.xlane.f32.xlu0 %v1062_v60 }
 0x366   : > { %549 = vadd.xlane.f32.xlu0 %v548_v61 }
 0x3b8   : > { %v623_v62 = vpop.f32.mrb[4].mxu1 }
 0x3b9   : > { %v1457_v63 = vpop.f32.mrb[5].mxu1 }
 0x3e7   : > { %v718_v2 = vpop.xlane.xlu0 %717 }
 0x3eb   : > { %v891_v1 = vpop.xlane.xlu1 %890 }
 0x3ef   : > { %v1064_v3 = vpop.xlane.xlu0 %1063 }
 0x3f3   : > { %v550_v4 = vpop.xlane.xlu0 %549 }
 0x3f4   : > { %1633 = vrcp.f32 %v550_v4 }
 0x3f5   : > { %1635 = vrcp.f32 %v718_v2 }
 0x3f6   : > { %1637 = vrcp.f32 %v891_v1 }
 0x3f7   : > { %1639 = vrcp.f32 %v1064_v3 }
 0x3fe   : > { %v1634_v5 = vpop.eup %1633 }
 0x3ff   : > { %v628_v6 = vmul.f32 %v1634_v5, %v623_v62  ;;  %v1636_v12 = vpop.eup %1635 }
 0x400   : > { %v1638_v17 = vpop.eup %1637 }
 0x401   : > { %629 = vst.msk [vmem:[#allocation3] sm:$0xff] %vm465_vm3, %v628_v6  ;;  %v1640_v21 = vpop.eup %1639 }
 0x42c   : > { %v791_v13 = vpop.f32.mrb[6].mxu1 }
 0x42d   : > { %v796_v15 = vmul.f32 %v1636_v12, %v791_v13  ;;  %v1467_v16 = vpop.f32.mrb[7].mxu1 }
 0x42f   : > { %798 = vrot.lane.b32.xlu1 %v796_v15, %s1863_s12 }
 0x430   : > { %v964_v18 = vpop.f32.mrb[8].mxu1 }
 0x431   : > { %v969_v19 = vmul.f32 %v1638_v17, %v964_v18  ;;  %v1477_v20 = vpop.f32.mrb[9].mxu1 }
 0x433   : > { %971 = vrot.lane.b32.xlu0 %v969_v19, %s1864_s11 }
 0x434   : > { %v1137_v22 = vpop.f32.mrb[10].mxu1 }
 0x435   : > { %v1142_v23 = vmul.f32 %v1640_v21, %v1137_v22  ;;  %v1487_v24 = vpop.f32.mrb[11].mxu1 }
 0x437   : > { %1144 = vrot.lane.b32.xlu1 %v1142_v23, %s1865_s14 }
 0x4a1   : > { %v799_v25 = vpop.permute.xlu1 %798 }
 0x4a2   : > { %802 = vst.msk [vmem:[#allocation3] sm:$0xff] %vm801_vm4, %v799_v25 }
 0x4a5   : > { %v972_v0 = vpop.permute.xlu0 %971 }
 0x4a6   : > { %975 = vst.msk [vmem:[#allocation3] sm:$0xff] %vm974_vm5, %v972_v0 }
 0x4a9   : > { %v1145_v26 = vpop.permute.xlu1 %1144 }
 0x4aa   : > { %1148 = vst.msk [vmem:[#allocation3] sm:$0xff] %vm1147_vm6, %v1145_v26 }
 0x4b1   : > { %v1149_v27 = vld [vmem:[#allocation3] sm:$0xff] }
 0x4b2   : > { %1497 = vmatmul.mubr.msk.f32.vlgmr.msra.gmra.mrb[8].mxu0 %vm307_vm1, %v1149_v27 }
 0x585   : > { %v1230_v29 = vpop.f32.mrb[8].mxu0 }
 0x586   : > { %v1231_v30 = vadd.f32 %v1389_v28, %v1230_v29  ;;  %v1498_v31 = vpop.f32.mrb[9].mxu0 }
 0x588   : > { %1234 = vst.msk [vmem:[%s297_s24] sm:$0xff] %vm307_vm1, %v1231_v30 }
 0x589   : > { %1768 = shalt.err (!%p1765_p0)
}
 0x58a   : > { %s1769_s10 = scalar_lea.hbm %s2202_s30, 128  ;;  %s1773_s11 = scalar_lea.hbm %s2257_s5, 256 }
 0x58b   : > { %p1770_p4 = scmp.ne.s32.totalorder %s2202_s30, %s1769_s10  ;;  %p1774_p1 = scmp.lt.u32.totalorder %s2202_s30, %s2257_s5 }
 0x58c   : > { %p1775_p12 = scmp.lt.u32.totalorder %s1773_s11, %s1769_s10  ;;  %p1777_p13 = scmp.lt.u32.totalorder %s1769_s10, %s2202_s30 }
 0x58d   : > { %p1771_p2 = pnand %p1770_p4, %p2057_p10 }
 0x58e   : > { %p1776_p11 = por %p1775_p12, %p1774_p1 }
 0x58f   : > { %p1772_p8 = pneg %p1771_p2 }
 0x590   : > { %p1778_p6 = por %p1777_p13, %p1776_p11 }
 0x592   : > { %p1779_p3 = pnand %p1778_p6, %p1772_p8 }
 0x594   : > { %1782 = shalt.err (!%p1779_p3)
}
 0x595   : > { %1531 = dma.vmem_to_hbm [thread:$0]  (%p2057_p10), %s2204_s15, 128, %s2202_s30, %s1236_s27  }
 0x596 PF: > { %s2279_s17 = sld [smem:[#allocation17_spill]]  ;;  %s2280_s25 = sld [smem:[#allocation18_spill]] }
 0x597   : > { %p2282_p7 = scmp.ge.s32.totalorder %s1845_s23, 2 }
 0x59c   : > { %s1262_s24 = sand.u32 1, %s2279_s17   ;;  %p2281_p5 = scmp.ne.s32.totalorder %s2280_s25, 0 }
 0x59d   : > { %s1263_s26 = scalar_lea.sflag [#allocation6], %s1262_s24 }
 0x59e   : > { %p1548_p9 = pnand %p2282_p7, %p2281_p5 }
 0x5a0   : > { %1820 = dma.done.wait (!%p1548_p9), %s1263_s26, 128  }
 0x5a1   : > { %1822 = vsyncadd (!%p1548_p9), %s1263_s26, 4294967168  ;;  %s23_s23 = sadd.s32 1, %s1845_s23   ;;  %s2283_s18 = smov %s1829_s19 }
 0x5a2   : > { %p20_p0 = scmp.ge.s32.totalorder %s23_s23, 4   ;;  %s2284_s19 = smov %s1833_s20 }
 0x5a3   : > { %s2285_s20 = smov %s2069_s13  ;;  %s2286_s21 = smov %s1841_s22 }
 0x5a4   : > { %s2287_s22 = smov %s2289_s8  ;;  %22 = sbr.rel (!%p20_p0) target bundleno = 8 (0x8), region = 102 }
 0x5ab   :  { %1268 = vsyncpa [#allocation5], 1 }
 0x5ac   :  { %1270 = vsyncpa [#allocation5 + $0x1], 1 }
 0x5ad   :  { %1271 = vsyncpa [#allocation8], 1 }
 0x5ae   :  { %1272 = vsyncpa [#allocation11], 1 }
 0x5af   :  { %1273 = vsyncpa [#allocation6], 1 }
 0x5b0   :  { %1275 = vsyncpa [#allocation6 + $0x1], 1 }

</bundles_post_ra>
